<compile_context>
chip_gen: v7x
topology: tpu7x:2x2x1
jax: 0.10.0
libtpu: 0.0.40
codegen_flags: <defaults>
</compile_context>

<pallas_src>
import functools
import math

import jax
import jax.numpy as jnp
from jax.experimental import pallas as pl
from jax.experimental.pallas import tpu as pltpu

K = 7                    # conv kernel size
PAD = (K - 1) // 2       # = 3
BN_EPS = 1e-5
LANE = 128


def _spatial_gate_kernel(x_ref, w_ref, b_ref, sel_ref, o_ref, pmax_ref, psum_ref, *,
                         W, off, lane_chunk):
    # x_ref:   (B, Cc, L)  native dtype VMEM  -- L = H*W, lane-dense
    # w_ref:   (2*K*K,)    f32 SMEM           -- conv weight * BN scale (mean taps also * 1/C)
    # b_ref:   (1,)        f32 SMEM           -- folded BN bias
    # sel_ref: (L, Lo)     f32 VMEM or None   -- 0/1 stride-decimation matrix (resident)
    # o_ref:   (1, B, Lo)  f32 VMEM           -- sublane+lane dense output slab
    # pmax_ref / psum_ref: (B, Lp) f32 VMEM scratch, persistent across the channel axis.
    #   Layout: [0, off) zero halo | [off, off+L) running channel max / sum | zero halo.
    B, _, L = x_ref.shape
    Lp = pmax_ref.shape[1]
    c_idx = pl.program_id(1)

    x = x_ref[...].astype(jnp.float32)        # DMA native dtype, cast per block (VPU)
    chunk_max = jnp.max(x, axis=1)            # (B, L)
    chunk_sum = jnp.sum(x, axis=1)            # (B, L), f32 accumulation

    @pl.when(c_idx == 0)
    def _init():
        # Zero only the halo strips (they stay zero afterwards; the interior is always
        # fully overwritten), then initialize the running max / sum.
        pmax_ref[:, 0:off] = jnp.zeros((B, off), jnp.float32)
        psum_ref[:, 0:off] = jnp.zeros((B, off), jnp.float32)
        pmax_ref[:, off + L:Lp] = jnp.zeros((B, Lp - off - L), jnp.float32)
        psum_ref[:, off + L:Lp] = jnp.zeros((B, Lp - off - L), jnp.float32)
        pmax_ref[:, off:off + L] = chunk_max
        psum_ref[:, off:off + L] = chunk_sum

    @pl.when(c_idx > 0)
    def _accumulate():
        pmax_ref[:, off:off + L] = jnp.maximum(pmax_ref[:, off:off + L], chunk_max)
        psum_ref[:, off:off + L] = psum_ref[:, off:off + L] + chunk_sum

    @pl.when(c_idx == pl.num_programs(1) - 1)
    def _finalize():
        bias = b_ref[0]
        Lo = o_ref.shape[2]
        dec = jnp.zeros((B, Lo), jnp.float32) if sel_ref is not None else None

        # Lane-chunked 7x7 conv on the zero-halo-padded flattened pooled planes: the
        # working set (7 kw accumulators + 2 small tap windows) stays in vregs; the
        # W-halo wrap is handled with per-kw column masks, the H-halo by the zero strips.
        c0 = 0
        while c0 < L:                          # static Python loop (L, chunk are ints)
            cl = min(lane_chunk, L - c0)
            col = (c0 + jax.lax.broadcasted_iota(jnp.int32, (1, cl), 1)) % W
            accs = [jnp.zeros((B, cl), jnp.float32) for _ in range(K)]
            for kh in range(K):
                s0 = off + c0 + (kh - PAD) * W - PAD
                win_max = pmax_ref[:, s0:s0 + cl + 2 * PAD]     # (B, cl+6)
                win_sum = psum_ref[:, s0:s0 + cl + 2 * PAD]
                for kw in range(K):
                    accs[kw] = (accs[kw]
                                + w_ref[kh * K + kw] * win_max[:, kw:kw + cl]
                                + w_ref[K * K + kh * K + kw] * win_sum[:, kw:kw + cl])
            conv = accs[PAD]                   # center kw: never wraps, no mask needed
            for kw in range(K):
                if kw == PAD:
                    continue
                valid = (col >= PAD - kw) & (col < W + PAD - kw)
                conv = conv + jnp.where(valid, accs[kw], 0.0)

            if sel_ref is None:
                o_ref[0, :, c0:c0 + cl] = jax.nn.sigmoid(conv + bias)
            else:
                # stride>1: in-kernel decimation via the resident 0/1 selection matrix
                # (exact-selection matmul on the otherwise idle MXU).
                dec = dec + jnp.dot(conv, sel_ref[c0:c0 + cl, :],
                                    preferred_element_type=jnp.float32)
            c0 += cl

        if sel_ref is not None:
            o_ref[0, :, :] = jax.nn.sigmoid(dec + bias)


def _device_params():
    """Per-generation (tiling budget, vmem_limit_bytes, prefer megacore split)."""
    try:
        kind = jax.devices()[0].device_kind.lower()
    except Exception:
        kind = ""
    if "v7" in kind or "7x" in kind:
        # v7x: 64 MiB physical VMEM, 2 TensorCores -> keep >= 2 batch blocks parallel.
        return 12 * 1024 * 1024, 32 * 1024 * 1024, True
    if "v5" in kind or "v6" in kind:
        # v5e / v6e: 128 MiB physical VMEM, single TC -> big blocks, avoid C-chunking.
        return 32 * 1024 * 1024, 64 * 1024 * 1024, False
    return 12 * 1024 * 1024, 32 * 1024 * 1024, False   # unknown: stay conservative


def _choose_tiles(N, C, L, Lp, Lo, x_itemsize, sel_elems, budget, prefer_split):
    """Pick (batch tile B, channel chunk Cc) under the per-generation VMEM budget."""

    def cost(b, cc):
        c = 2 * b * cc * L * x_itemsize      # double-buffered input blocks (native dtype)
        c += 2 * b * Lo * 4                  # double-buffered output block
        c += 2 * b * Lp * 4                  # pmax + psum persistent scratch
        c += 2 * sel_elems * 4               # resident stride-decimation matrix
        c += 2 * 1024 * 1024                 # slack for conv-chunk temporaries
        return c

    divisors = [d for d in range(1, N + 1) if N % d == 0]

    def rank(b):
        keeps_both_cores_busy = (N // b >= 2) or (N == 1)      # megacore (v7x) only
        fills_sublanes = (b % 8 == 0) or (b == N)              # (B, ...) on sublanes
        return (keeps_both_cores_busy if prefer_split else True, fills_sublanes, b)

    b_opts = sorted(divisors, key=rank, reverse=True)
    cc_opts = [C] + sorted((d for d in range(8, C, 8) if C % d == 0), reverse=True)
    for cc in cc_opts:        # prefer untiled C (no per-chunk scratch RMW traffic)
        for b in b_opts:
            if cost(b, cc) <= budget:
                return b, cc
    return 1, cc_opts[-1]


def spatial_gate_pallas(x, conv_w, bn_gamma, bn_beta,
                        bn_running_mean=0.0, bn_running_var=1.0, stride=1):
    """x: (N, C, H, W); conv_w: (1, 2, 7, 7) OIHW. Returns (N, 1, Hout, Wout) f32."""
    N, C, H, W = x.shape
    L = H * W
    Hout = (H - 1) // stride + 1
    Wout = (W - 1) // stride + 1
    Lout = Hout * Wout

    budget, vmem_limit, prefer_split = _device_params()

    # Fold inference BatchNorm into the conv weights + one scalar bias, and fold the
    # channel-mean's 1/C into the mean-channel taps:
    #   gamma * (conv(x) - mean) / sqrt(var + eps) + beta
    #     = conv_{w * scale}([max, sum/C]) + (beta - mean * scale)
    # TODO(synk): training-mode BatchNorm (batch statistics) is not implemented;
    # inference running stats are folded into the weights/bias here.
    scale = jnp.asarray(bn_gamma, jnp.float32) / jnp.sqrt(
        jnp.asarray(bn_running_var, jnp.float32) + BN_EPS)
    w_max = conv_w[0, 0].reshape(-1).astype(jnp.float32) * scale
    w_mean = conv_w[0, 1].reshape(-1).astype(jnp.float32) * (scale / C)
    w_flat = jnp.concatenate([w_max, w_mean])                            # (2*K*K,)
    bias = jnp.reshape(jnp.asarray(bn_beta, jnp.float32)
                       - jnp.asarray(bn_running_mean, jnp.float32) * scale, (1,))

    # stride decimation: in-kernel (resident 0/1 selection matrix + MXU matmul, only
    # Hout*Wout written back to HBM) while the matrix fits the budget, otherwise fall
    # back to XLA subsampling (glue path for huge maps).
    decimate_in_kernel = (stride == 1) or (8 * L * Lout <= budget // 4)
    if stride > 1 and decimate_in_kernel:
        Ho_s, Wo_s = Hout, Wout
        rows = jnp.arange(L, dtype=jnp.int32)
        tgt = ((jnp.arange(Lout, dtype=jnp.int32) // Wout) * (stride * W)
               + (jnp.arange(Lout, dtype=jnp.int32) % Wout) * stride)
        sel = (rows[:, None] == tgt[None, :]).astype(jnp.float32)        # (L, Lout)
    else:
        Ho_s, Wo_s = H, W
        sel = None
    Lo_s = Ho_s * Wo_s

    # Flattened zero-halo-padded pooled planes: interior starts at lane-aligned
    # offset `off` >= PAD*(W+1); total padded length Lp.
    halo = PAD * (W + 1)
    off = ((halo + LANE - 1) // LANE) * LANE
    Lp = off + L + halo

    x_itemsize = jnp.dtype(x.dtype).itemsize
    sel_elems = L * Lo_s if sel is not None else 0
    B, Cc = _choose_tiles(N, C, L, Lp, Lo_s, x_itemsize, sel_elems, budget, prefer_split)
    grid = (N // B, C // Cc)

    # A (B, cl) f32 value occupies ceil(B/8) * cl/128 vregs; size the finalize lane
    # chunk so 7 accumulators + 2 tap windows stay comfortably inside the 64-vreg file.
    lane_chunk = max(LANE, (4096 // max(B, 8)) // LANE * LANE)

    x_flat = x.reshape(N, C, L)              # native dtype, lane-dense last dim = H*W

    kernel_kw = dict(W=W, off=off, lane_chunk=lane_chunk)
    if sel is None:
        kernel = lambda xr, wr, br, orf, pm, ps: _spatial_gate_kernel(
            xr, wr, br, None, orf, pm, ps, **kernel_kw)
    else:
        kernel = functools.partial(_spatial_gate_kernel, **kernel_kw)

    in_specs = [
        pl.BlockSpec((B, Cc, L), lambda n, c: (n, c, 0)),
        pl.BlockSpec(memory_space=pltpu.MemorySpace.SMEM),
        pl.BlockSpec(memory_space=pltpu.MemorySpace.SMEM),
    ]
    args = [x_flat, w_flat, bias]
    if sel is not None:
        in_specs.append(pl.BlockSpec((L, Lo_s), lambda n, c: (0, 0)))
        args.append(sel)

    out = pl.pallas_call(
        kernel,
        out_shape=jax.ShapeDtypeStruct((N // B, B, Lo_s), jnp.float32),
        grid=grid,
        in_specs=in_specs,
        out_specs=pl.BlockSpec((1, B, Lo_s), lambda n, c: (n, 0, 0)),
        scratch_shapes=[pltpu.VMEM((B, Lp), jnp.float32),
                        pltpu.VMEM((B, Lp), jnp.float32)],
        compiler_params=pltpu.CompilerParams(
            # batch axis megacore-parallel (v7x); channel-reduction axis sequential
            dimension_semantics=("parallel", "arbitrary"),
            vmem_limit_bytes=vmem_limit),
    )(*args)

    out = out.reshape(N, 1, Ho_s, Wo_s)
    if stride > 1 and not decimate_in_kernel:
        out = out[:, :, ::stride, ::stride]
    return out


def spatial_gate_reference(x, conv_w, bn_gamma, bn_beta,
                           bn_running_mean=0.0, bn_running_var=1.0, stride=1):
    """Pure-JAX reference (lax.conv) for validation."""
    x = x.astype(jnp.float32)
    ch_max = jnp.max(x, axis=1, keepdims=True)
    ch_mean = jnp.mean(x, axis=1, keepdims=True)
    comp = jnp.concatenate([ch_max, ch_mean], axis=1)                 # (N, 2, H, W)
    out = jax.lax.conv_general_dilated(
        comp, conv_w.astype(jnp.float32), window_strides=(stride, stride),
        padding=[(PAD, PAD), (PAD, PAD)],
        dimension_numbers=("NCHW", "OIHW", "NCHW"))
    out = (out - bn_running_mean) / jnp.sqrt(bn_running_var + BN_EPS) * bn_gamma + bn_beta
    return jax.nn.sigmoid(out)


if __name__ == "__main__":
    key = jax.random.PRNGKey(0)
    k_x, k_w, k_x2 = jax.random.split(key, 3)

    N, C, H, W = 2, 4, 16, 16
    x = jax.random.normal(k_x, (N, C, H, W), dtype=jnp.float32)

    # Conv2d(2, 1, 7) weight, kaiming_normal_(mode='fan_out', nonlinearity='relu'):
    # fan_out = out_channels * K * K = 49, std = sqrt(2 / fan_out).
    conv_w = jax.random.normal(k_w, (1, 2, K, K), dtype=jnp.float32) * math.sqrt(2.0 / 49.0)

    # Non-trivial inference BatchNorm (running stats + affine), stride 1.
    g, b, rm, rv = 0.8, 0.1, 0.05, 1.3
    out = spatial_gate_pallas(x, conv_w, g, b, rm, rv, stride=1)
    ref = spatial_gate_reference(x, conv_w, g, b, rm, rv, stride=1)
    jax.block_until_ready(out)
    assert out.shape == (N, 1, H, W)
    assert jnp.max(jnp.abs(out - ref)) < 1e-5, "mismatch vs reference (stride=1)"

    # stride=2 path (in-kernel decimation via resident selection matrix).
    out_s2 = spatial_gate_pallas(x, conv_w, g, b, rm, rv, stride=2)
    ref_s2 = spatial_gate_reference(x, conv_w, g, b, rm, rv, stride=2)
    jax.block_until_ready(out_s2)
    assert out_s2.shape == (N, 1, H // 2, W // 2)
    assert jnp.max(jnp.abs(out_s2 - ref_s2)) < 1e-5, "mismatch vs reference (stride=2)"

    # Native bf16 input path (kernel DMAs bf16, casts per block; reference on same values).
    x_bf = x.astype(jnp.bfloat16)
    out_bf = spatial_gate_pallas(x_bf, conv_w, g, b, rm, rv, stride=1)
    ref_bf = spatial_gate_reference(x_bf.astype(jnp.float32), conv_w, g, b, rm, rv, stride=1)
    jax.block_until_ready(out_bf)
    assert jnp.max(jnp.abs(out_bf - ref_bf)) < 1e-4, "mismatch vs reference (bf16 input)"

    # Larger spatial map to exercise the lane-chunked finalize conv (multiple chunks).
    N2, C2, H2, W2 = 2, 8, 48, 48
    x2 = jax.random.normal(k_x2, (N2, C2, H2, W2), dtype=jnp.float32)
    out_l = spatial_gate_pallas(x2, conv_w, g, b, rm, rv, stride=1)
    ref_l = spatial_gate_reference(x2, conv_w, g, b, rm, rv, stride=1)
    jax.block_until_ready(out_l)
    assert out_l.shape == (N2, 1, H2, W2)
    assert jnp.max(jnp.abs(out_l - ref_l)) < 1e-5, "mismatch vs reference (chunked conv)"

    # Faithful to SpatialGate.random_init(): BN gamma=0, beta=0 => output == 0.5.
    out_init = spatial_gate_pallas(x, conv_w, 0.0, 0.0, 0.0, 1.0, stride=1)
    jax.block_until_ready(out_init)
    assert jnp.max(jnp.abs(out_init - 0.5)) < 1e-6

    print("KERNEL_OK")
</pallas_src>

<mosaic_0001>
module attributes {stable_mosaic.version = 11 : i64} {
  func.func @_lambda_(%arg0: i32, %arg1: i32, %arg2: memref<2x4x256xf32, #tpu.memory_space<vmem>>, %arg3: memref<98xf32, #tpu.memory_space<smem>>, %arg4: memref<1xf32, #tpu.memory_space<smem>>, %arg5: memref<1x2x256xf32, #tpu.memory_space<vmem>>, %arg6: memref<2x435xf32, #tpu.memory_space<vmem>>, %arg7: memref<2x435xf32, #tpu.memory_space<vmem>>) attributes {dimension_semantics = [#tpu.dimension_semantics<parallel>, #tpu.dimension_semantics<arbitrary>], iteration_bounds = array<i64: 1, 1>, scalar_prefetch = 0 : i64, scratch_operands = 2 : i64, tpu.core_type = #tpu.core_type<tc>, window_params = [{transform_indices = @transform_0, window_bounds = array<i64: 2, 4, 256>}, {transform_indices = @transform_1, window_bounds = array<i64: 98>}, {transform_indices = @transform_2, window_bounds = array<i64: 1>}, {transform_indices = @transform_3, window_bounds = array<i64: 1, 2, 256>}]} {
    %c0 = arith.constant 0 : index
    %c0_0 = arith.constant 0 : index
    %c0_1 = arith.constant 0 : index
    %0 = vector.load %arg2[%c0, %c0_0, %c0_1] : memref<2x4x256xf32, #tpu.memory_space<vmem>>, vector<2x4x256xf32>
    %cst = arith.constant dense<0xFF800000> : vector<2x256xf32>
    %1 = vector.multi_reduction <maximumf>, %0, %cst [1] : vector<2x4x256xf32> to vector<2x256xf32>
    %cst_2 = arith.constant dense<0.000000e+00> : vector<2x256xf32>
    %2 = vector.multi_reduction <add>, %0, %cst_2 [1] : vector<2x4x256xf32> to vector<2x256xf32>
    %c0_i32 = arith.constant 0 : i32
    %3 = arith.cmpi eq, %arg1, %c0_i32 : i32
    %4 = arith.extui %3 : i1 to i32
    %c0_i32_3 = arith.constant 0 : i32
    %5 = arith.cmpi ne, %4, %c0_i32_3 : i32
    scf.if %5 {
      %cst_8 = arith.constant 0.000000e+00 : f32
      %12 = vector.broadcast %cst_8 : f32 to vector<2x128xf32>
      %c0_9 = arith.constant 0 : index
      %c0_10 = arith.constant 0 : index
      %13 = vector.load %arg6[%c0_9, %c0_10] : memref<2x435xf32, #tpu.memory_space<vmem>>, vector<2x128xf32>
      tpu.vector_store %arg6[%c0_9, %c0_10], %12 {strides = array<i32>} : memref<2x435xf32, #tpu.memory_space<vmem>>, vector<2x128xf32>,
      %cst_11 = arith.constant 0.000000e+00 : f32
      %14 = vector.broadcast %cst_11 : f32 to vector<2x128xf32>
      %c0_12 = arith.constant 0 : index
      %c0_13 = arith.constant 0 : index
      %15 = vector.load %arg7[%c0_12, %c0_13] : memref<2x435xf32, #tpu.memory_space<vmem>>, vector<2x128xf32>
      tpu.vector_store %arg7[%c0_12, %c0_13], %14 {strides = array<i32>} : memref<2x435xf32, #tpu.memory_space<vmem>>, vector<2x128xf32>,
      %cst_14 = arith.constant 0.000000e+00 : f32
      %16 = vector.broadcast %cst_14 : f32 to vector<2x51xf32>
      %c0_15 = arith.constant 0 : index
      %c384 = arith.constant 384 : index
      %17 = vector.load %arg6[%c0_15, %c384] : memref<2x435xf32, #tpu.memory_space<vmem>>, vector<2x51xf32>
      tpu.vector_store %arg6[%c0_15, %c384], %16 {strides = array<i32>} : memref<2x435xf32, #tpu.memory_space<vmem>>, vector<2x51xf32>,
      %cst_16 = arith.constant 0.000000e+00 : f32
      %18 = vector.broadcast %cst_16 : f32 to vector<2x51xf32>
      %c0_17 = arith.constant 0 : index
      %c384_18 = arith.constant 384 : index
      %19 = vector.load %arg7[%c0_17, %c384_18] : memref<2x435xf32, #tpu.memory_space<vmem>>, vector<2x51xf32>
      tpu.vector_store %arg7[%c0_17, %c384_18], %18 {strides = array<i32>} : memref<2x435xf32, #tpu.memory_space<vmem>>, vector<2x51xf32>,
      %c0_19 = arith.constant 0 : index
      %c128 = arith.constant 128 : index
      %20 = vector.load %arg6[%c0_19, %c128] : memref<2x435xf32, #tpu.memory_space<vmem>>, vector<2x256xf32>
      tpu.vector_store %arg6[%c0_19, %c128], %1 {strides = array<i32>} : memref<2x435xf32, #tpu.memory_space<vmem>>, vector<2x256xf32>,
      %c0_20 = arith.constant 0 : index
      %c128_21 = arith.constant 128 : index
      %21 = vector.load %arg7[%c0_20, %c128_21] : memref<2x435xf32, #tpu.memory_space<vmem>>, vector<2x256xf32>
      tpu.vector_store %arg7[%c0_20, %c128_21], %2 {strides = array<i32>} : memref<2x435xf32, #tpu.memory_space<vmem>>, vector<2x256xf32>,
    } else {
    }
    %c0_i32_4 = arith.constant 0 : i32
    %6 = arith.cmpi sgt, %arg1, %c0_i32_4 : i32
    %7 = arith.extui %6 : i1 to i32
    %c0_i32_5 = arith.constant 0 : i32
    %8 = arith.cmpi ne, %7, %c0_i32_5 : i32
    scf.if %8 {
      %c0_8 = arith.constant 0 : index
      %c128 = arith.constant 128 : index
      %12 = vector.load %arg6[%c0_8, %c128] : memref<2x435xf32, #tpu.memory_space<vmem>>, vector<2x256xf32>
      %13 = arith.maximumf %12, %1 : vector<2x256xf32>
      %c0_9 = arith.constant 0 : index
      %c128_10 = arith.constant 128 : index
      %14 = vector.load %arg6[%c0_9, %c128_10] : memref<2x435xf32, #tpu.memory_space<vmem>>, vector<2x256xf32>
      tpu.vector_store %arg6[%c0_9, %c128_10], %13 {strides = array<i32>} : memref<2x435xf32, #tpu.memory_space<vmem>>, vector<2x256xf32>,
      %c0_11 = arith.constant 0 : index
      %c128_12 = arith.constant 128 : index
      %15 = vector.load %arg7[%c0_11, %c128_12] : memref<2x435xf32, #tpu.memory_space<vmem>>, vector<2x256xf32>
      %16 = arith.addf %15, %2 : vector<2x256xf32>
      %c0_13 = arith.constant 0 : index
      %c128_14 = arith.constant 128 : index
      %17 = vector.load %arg7[%c0_13, %c128_14] : memref<2x435xf32, #tpu.memory_space<vmem>>, vector<2x256xf32>
      tpu.vector_store %arg7[%c0_13, %c128_14], %16 {strides = array<i32>} : memref<2x435xf32, #tpu.memory_space<vmem>>, vector<2x256xf32>,
    } else {
    }
    %c0_i32_6 = arith.constant 0 : i32
    %9 = arith.cmpi eq, %arg1, %c0_i32_6 : i32
    %10 = arith.extui %9 : i1 to i32
    %c0_i32_7 = arith.constant 0 : i32
    %11 = arith.cmpi ne, %10, %c0_i32_7 : i32
    scf.if %11 {
      %c0_8 = arith.constant 0 : index
      %12 = memref.load %arg4[%c0_8] : memref<1xf32, #tpu.memory_space<smem>>
      %13 = tpu.iota {dimensions = array<i32: 1>} : vector<1x256xi32>
      %c0_i32_9 = arith.constant 0 : i32
      %14 = vector.broadcast %c0_i32_9 : i32 to vector<1x256xi32>
      %15 = arith.addi %14, %13 : vector<1x256xi32>
      %c16_i32 = arith.constant 16 : i32
      %c0_i32_10 = arith.constant 0 : i32
      %16 = arith.cmpi eq, %c16_i32, %c0_i32_10 : i32
      %c1_i32 = arith.constant 1 : i32
      %17 = arith.select %16, %c1_i32, %c16_i32 : i32
      %18 = vector.broadcast %17 : i32 to vector<1x256xi32>
      %19 = arith.remsi %15, %18 : vector<1x256xi32>
      %c0_i32_11 = arith.constant 0 : i32
      %20 = vector.broadcast %c0_i32_11 : i32 to vector<1x256xi32>
      %21 = arith.cmpi ne, %19, %20 : vector<1x256xi32>
      %c0_i32_12 = arith.constant 0 : i32
      %22 = vector.broadcast %c0_i32_12 : i32 to vector<1x256xi32>
      %23 = arith.cmpi slt, %19, %22 : vector<1x256xi32>
      %c0_i32_13 = arith.constant 0 : i32
      %24 = arith.cmpi slt, %17, %c0_i32_13 : i32
      %25 = vector.broadcast %24 : i1 to vector<1x256xi1>
      %26 = vector.broadcast %25 : vector<1x256xi1> to vector<1x256xi1>
      %27 = arith.xori %23, %26 : vector<1x256xi1>
      %28 = arith.andi %27, %21 : vector<1x256xi1>
      %29 = vector.broadcast %17 : i32 to vector<1x256xi32>
      %30 = arith.addi %19, %29 : vector<1x256xi32>
      %31 = arith.select %28, %30, %19 : vector<1x256xi1>, vector<1x256xi32>
      %cst_14 = arith.constant 0.000000e+00 : f32
      %32 = vector.broadcast %cst_14 : f32 to vector<2x256xf32>
      %cst_15 = arith.constant 0.000000e+00 : f32
      %33 = vector.broadcast %cst_15 : f32 to vector<2x256xf32>
      %cst_16 = arith.constant 0.000000e+00 : f32
      %34 = vector.broadcast %cst_16 : f32 to vector<2x256xf32>
      %cst_17 = arith.constant 0.000000e+00 : f32
      %35 = vector.broadcast %cst_17 : f32 to vector<2x256xf32>
      %cst_18 = arith.constant 0.000000e+00 : f32
      %36 = vector.broadcast %cst_18 : f32 to vector<2x256xf32>
      %cst_19 = arith.constant 0.000000e+00 : f32
      %37 = vector.broadcast %cst_19 : f32 to vector<2x256xf32>
      %cst_20 = arith.constant 0.000000e+00 : f32
      %38 = vector.broadcast %cst_20 : f32 to vector<2x256xf32>
      %c0_21 = arith.constant 0 : index
      %c77 = arith.constant 77 : index
      %39 = vector.load %arg6[%c0_21, %c77] : memref<2x435xf32, #tpu.memory_space<vmem>>, vector<2x262xf32>
      %c0_22 = arith.constant 0 : index
      %c77_23 = arith.constant 77 : index
      %40 = vector.load %arg7[%c0_22, %c77_23] : memref<2x435xf32, #tpu.memory_space<vmem>>, vector<2x262xf32>
      %c0_24 = arith.constant 0 : index
      %41 = memref.load %arg3[%c0_24] : memref<98xf32, #tpu.memory_space<smem>>
      %42 = vector.extract_strided_slice %39 {offsets = [0, 0], sizes = [2, 256], strides = [1, 1]} : vector<2x262xf32> to vector<2x256xf32>
      %43 = vector.broadcast %41 : f32 to vector<2x256xf32>
      %44 = arith.mulf %43, %42 : vector<2x256xf32>
      %45 = arith.addf %32, %44 : vector<2x256xf32>
      %c49 = arith.constant 49 : index
      %46 = memref.load %arg3[%c49] : memref<98xf32, #tpu.memory_space<smem>>
      %47 = vector.extract_strided_slice %40 {offsets = [0, 0], sizes = [2, 256], strides = [1, 1]} : vector<2x262xf32> to vector<2x256xf32>
      %48 = vector.broadcast %46 : f32 to vector<2x256xf32>
      %49 = arith.mulf %48, %47 : vector<2x256xf32>
      %50 = arith.addf %45, %49 : vector<2x256xf32>
      %c1 = arith.constant 1 : index
      %51 = memref.load %arg3[%c1] : memref<98xf32, #tpu.memory_space<smem>>
      %52 = vector.extract_strided_slice %39 {offsets = [0, 1], sizes = [2, 256], strides = [1, 1]} : vector<2x262xf32> to vector<2x256xf32>
      %53 = vector.broadcast %51 : f32 to vector<2x256xf32>
      %54 = arith.mulf %53, %52 : vector<2x256xf32>
      %55 = arith.addf %33, %54 : vector<2x256xf32>
      %c50 = arith.constant 50 : index
      %56 = memref.load %arg3[%c50] : memref<98xf32, #tpu.memory_space<smem>>
      %57 = vector.extract_strided_slice %40 {offsets = [0, 1], sizes = [2, 256], strides = [1, 1]} : vector<2x262xf32> to vector<2x256xf32>
      %58 = vector.broadcast %56 : f32 to vector<2x256xf32>
      %59 = arith.mulf %58, %57 : vector<2x256xf32>
      %60 = arith.addf %55, %59 : vector<2x256xf32>
      %c2 = arith.constant 2 : index
      %61 = memref.load %arg3[%c2] : memref<98xf32, #tpu.memory_space<smem>>
      %62 = vector.extract_strided_slice %39 {offsets = [0, 2], sizes = [2, 256], strides = [1, 1]} : vector<2x262xf32> to vector<2x256xf32>
      %63 = vector.broadcast %61 : f32 to vector<2x256xf32>
      %64 = arith.mulf %63, %62 : vector<2x256xf32>
      %65 = arith.addf %34, %64 : vector<2x256xf32>
      %c51 = arith.constant 51 : index
      %66 = memref.load %arg3[%c51] : memref<98xf32, #tpu.memory_space<smem>>
      %67 = vector.extract_strided_slice %40 {offsets = [0, 2], sizes = [2, 256], strides = [1, 1]} : vector<2x262xf32> to vector<2x256xf32>
      %68 = vector.broadcast %66 : f32 to vector<2x256xf32>
      %69 = arith.mulf %68, %67 : vector<2x256xf32>
      %70 = arith.addf %65, %69 : vector<2x256xf32>
      %c3 = arith.constant 3 : index
      %71 = memref.load %arg3[%c3] : memref<98xf32, #tpu.memory_space<smem>>
      %72 = vector.extract_strided_slice %39 {offsets = [0, 3], sizes = [2, 256], strides = [1, 1]} : vector<2x262xf32> to vector<2x256xf32>
      %73 = vector.broadcast %71 : f32 to vector<2x256xf32>
      %74 = arith.mulf %73, %72 : vector<2x256xf32>
      %75 = arith.addf %35, %74 : vector<2x256xf32>
      %c52 = arith.constant 52 : index
      %76 = memref.load %arg3[%c52] : memref<98xf32, #tpu.memory_space<smem>>
      %77 = vector.extract_strided_slice %40 {offsets = [0, 3], sizes = [2, 256], strides = [1, 1]} : vector<2x262xf32> to vector<2x256xf32>
      %78 = vector.broadcast %76 : f32 to vector<2x256xf32>
      %79 = arith.mulf %78, %77 : vector<2x256xf32>
      %80 = arith.addf %75, %79 : vector<2x256xf32>
      %c4 = arith.constant 4 : index
      %81 = memref.load %arg3[%c4] : memref<98xf32, #tpu.memory_space<smem>>
      %82 = vector.extract_strided_slice %39 {offsets = [0, 4], sizes = [2, 256], strides = [1, 1]} : vector<2x262xf32> to vector<2x256xf32>
      %83 = vector.broadcast %81 : f32 to vector<2x256xf32>
      %84 = arith.mulf %83, %82 : vector<2x256xf32>
      %85 = arith.addf %36, %84 : vector<2x256xf32>
      %c53 = arith.constant 53 : index
      %86 = memref.load %arg3[%c53] : memref<98xf32, #tpu.memory_space<smem>>
      %87 = vector.extract_strided_slice %40 {offsets = [0, 4], sizes = [2, 256], strides = [1, 1]} : vector<2x262xf32> to vector<2x256xf32>
      %88 = vector.broadcast %86 : f32 to vector<2x256xf32>
      %89 = arith.mulf %88, %87 : vector<2x256xf32>
      %90 = arith.addf %85, %89 : vector<2x256xf32>
      %c5 = arith.constant 5 : index
      %91 = memref.load %arg3[%c5] : memref<98xf32, #tpu.memory_space<smem>>
      %92 = vector.extract_strided_slice %39 {offsets = [0, 5], sizes = [2, 256], strides = [1, 1]} : vector<2x262xf32> to vector<2x256xf32>
      %93 = vector.broadcast %91 : f32 to vector<2x256xf32>
      %94 = arith.mulf %93, %92 : vector<2x256xf32>
      %95 = arith.addf %37, %94 : vector<2x256xf32>
      %c54 = arith.constant 54 : index
      %96 = memref.load %arg3[%c54] : memref<98xf32, #tpu.memory_space<smem>>
      %97 = vector.extract_strided_slice %40 {offsets = [0, 5], sizes = [2, 256], strides = [1, 1]} : vector<2x262xf32> to vector<2x256xf32>
      %98 = vector.broadcast %96 : f32 to vector<2x256xf32>
      %99 = arith.mulf %98, %97 : vector<2x256xf32>
      %100 = arith.addf %95, %99 : vector<2x256xf32>
      %c6 = arith.constant 6 : index
      %101 = memref.load %arg3[%c6] : memref<98xf32, #tpu.memory_space<smem>>
      %102 = vector.extract_strided_slice %39 {offsets = [0, 6], sizes = [2, 256], strides = [1, 1]} : vector<2x262xf32> to vector<2x256xf32>
      %103 = vector.broadcast %101 : f32 to vector<2x256xf32>
      %104 = arith.mulf %103, %102 : vector<2x256xf32>
      %105 = arith.addf %38, %104 : vector<2x256xf32>
      %c55 = arith.constant 55 : index
      %106 = memref.load %arg3[%c55] : memref<98xf32, #tpu.memory_space<smem>>
      %107 = vector.extract_strided_slice %40 {offsets = [0, 6], sizes = [2, 256], strides = [1, 1]} : vector<2x262xf32> to vector<2x256xf32>
      %108 = vector.broadcast %106 : f32 to vector<2x256xf32>
      %109 = arith.mulf %108, %107 : vector<2x256xf32>
      %110 = arith.addf %105, %109 : vector<2x256xf32>
      %c0_25 = arith.constant 0 : index
      %c93 = arith.constant 93 : index
      %111 = vector.load %arg6[%c0_25, %c93] : memref<2x435xf32, #tpu.memory_space<vmem>>, vector<2x262xf32>
      %c0_26 = arith.constant 0 : index
      %c93_27 = arith.constant 93 : index
      %112 = vector.load %arg7[%c0_26, %c93_27] : memref<2x435xf32, #tpu.memory_space<vmem>>, vector<2x262xf32>
      %c7 = arith.constant 7 : index
      %113 = memref.load %arg3[%c7] : memref<98xf32, #tpu.memory_space<smem>>
      %114 = vector.extract_strided_slice %111 {offsets = [0, 0], sizes = [2, 256], strides = [1, 1]} : vector<2x262xf32> to vector<2x256xf32>
      %115 = vector.broadcast %113 : f32 to vector<2x256xf32>
      %116 = arith.mulf %115, %114 : vector<2x256xf32>
      %117 = arith.addf %50, %116 : vector<2x256xf32>
      %c56 = arith.constant 56 : index
      %118 = memref.load %arg3[%c56] : memref<98xf32, #tpu.memory_space<smem>>
      %119 = vector.extract_strided_slice %112 {offsets = [0, 0], sizes = [2, 256], strides = [1, 1]} : vector<2x262xf32> to vector<2x256xf32>
      %120 = vector.broadcast %118 : f32 to vector<2x256xf32>
      %121 = arith.mulf %120, %119 : vector<2x256xf32>
      %122 = arith.addf %117, %121 : vector<2x256xf32>
      %c8 = arith.constant 8 : index
      %123 = memref.load %arg3[%c8] : memref<98xf32, #tpu.memory_space<smem>>
      %124 = vector.extract_strided_slice %111 {offsets = [0, 1], sizes = [2, 256], strides = [1, 1]} : vector<2x262xf32> to vector<2x256xf32>
      %125 = vector.broadcast %123 : f32 to vector<2x256xf32>
      %126 = arith.mulf %125, %124 : vector<2x256xf32>
      %127 = arith.addf %60, %126 : vector<2x256xf32>
      %c57 = arith.constant 57 : index
      %128 = memref.load %arg3[%c57] : memref<98xf32, #tpu.memory_space<smem>>
      %129 = vector.extract_strided_slice %112 {offsets = [0, 1], sizes = [2, 256], strides = [1, 1]} : vector<2x262xf32> to vector<2x256xf32>
      %130 = vector.broadcast %128 : f32 to vector<2x256xf32>
      %131 = arith.mulf %130, %129 : vector<2x256xf32>
      %132 = arith.addf %127, %131 : vector<2x256xf32>
      %c9 = arith.constant 9 : index
      %133 = memref.load %arg3[%c9] : memref<98xf32, #tpu.memory_space<smem>>
      %134 = vector.extract_strided_slice %111 {offsets = [0, 2], sizes = [2, 256], strides = [1, 1]} : vector<2x262xf32> to vector<2x256xf32>
      %135 = vector.broadcast %133 : f32 to vector<2x256xf32>
      %136 = arith.mulf %135, %134 : vector<2x256xf32>
      %137 = arith.addf %70, %136 : vector<2x256xf32>
      %c58 = arith.constant 58 : index
      %138 = memref.load %arg3[%c58] : memref<98xf32, #tpu.memory_space<smem>>
      %139 = vector.extract_strided_slice %112 {offsets = [0, 2], sizes = [2, 256], strides = [1, 1]} : vector<2x262xf32> to vector<2x256xf32>
      %140 = vector.broadcast %138 : f32 to vector<2x256xf32>
      %141 = arith.mulf %140, %139 : vector<2x256xf32>
      %142 = arith.addf %137, %141 : vector<2x256xf32>
      %c10 = arith.constant 10 : index
      %143 = memref.load %arg3[%c10] : memref<98xf32, #tpu.memory_space<smem>>
      %144 = vector.extract_strided_slice %111 {offsets = [0, 3], sizes = [2, 256], strides = [1, 1]} : vector<2x262xf32> to vector<2x256xf32>
      %145 = vector.broadcast %143 : f32 to vector<2x256xf32>
      %146 = arith.mulf %145, %144 : vector<2x256xf32>
      %147 = arith.addf %80, %146 : vector<2x256xf32>
      %c59 = arith.constant 59 : index
      %148 = memref.load %arg3[%c59] : memref<98xf32, #tpu.memory_space<smem>>
      %149 = vector.extract_strided_slice %112 {offsets = [0, 3], sizes = [2, 256], strides = [1, 1]} : vector<2x262xf32> to vector<2x256xf32>
      %150 = vector.broadcast %148 : f32 to vector<2x256xf32>
      %151 = arith.mulf %150, %149 : vector<2x256xf32>
      %152 = arith.addf %147, %151 : vector<2x256xf32>
      %c11 = arith.constant 11 : index
      %153 = memref.load %arg3[%c11] : memref<98xf32, #tpu.memory_space<smem>>
      %154 = vector.extract_strided_slice %111 {offsets = [0, 4], sizes = [2, 256], strides = [1, 1]} : vector<2x262xf32> to vector<2x256xf32>
      %155 = vector.broadcast %153 : f32 to vector<2x256xf32>
      %156 = arith.mulf %155, %154 : vector<2x256xf32>
      %157 = arith.addf %90, %156 : vector<2x256xf32>
      %c60 = arith.constant 60 : index
      %158 = memref.load %arg3[%c60] : memref<98xf32, #tpu.memory_space<smem>>
      %159 = vector.extract_strided_slice %112 {offsets = [0, 4], sizes = [2, 256], strides = [1, 1]} : vector<2x262xf32> to vector<2x256xf32>
      %160 = vector.broadcast %158 : f32 to vector<2x256xf32>
      %161 = arith.mulf %160, %159 : vector<2x256xf32>
      %162 = arith.addf %157, %161 : vector<2x256xf32>
      %c12 = arith.constant 12 : index
      %163 = memref.load %arg3[%c12] : memref<98xf32, #tpu.memory_space<smem>>
      %164 = vector.extract_strided_slice %111 {offsets = [0, 5], sizes = [2, 256], strides = [1, 1]} : vector<2x262xf32> to vector<2x256xf32>
      %165 = vector.broadcast %163 : f32 to vector<2x256xf32>
      %166 = arith.mulf %165, %164 : vector<2x256xf32>
      %167 = arith.addf %100, %166 : vector<2x256xf32>
      %c61 = arith.constant 61 : index
      %168 = memref.load %arg3[%c61] : memref<98xf32, #tpu.memory_space<smem>>
      %169 = vector.extract_strided_slice %112 {offsets = [0, 5], sizes = [2, 256], strides = [1, 1]} : vector<2x262xf32> to vector<2x256xf32>
      %170 = vector.broadcast %168 : f32 to vector<2x256xf32>
      %171 = arith.mulf %170, %169 : vector<2x256xf32>
      %172 = arith.addf %167, %171 : vector<2x256xf32>
      %c13 = arith.constant 13 : index
      %173 = memref.load %arg3[%c13] : memref<98xf32, #tpu.memory_space<smem>>
      %174 = vector.extract_strided_slice %111 {offsets = [0, 6], sizes = [2, 256], strides = [1, 1]} : vector<2x262xf32> to vector<2x256xf32>
      %175 = vector.broadcast %173 : f32 to vector<2x256xf32>
      %176 = arith.mulf %175, %174 : vector<2x256xf32>
      %177 = arith.addf %110, %176 : vector<2x256xf32>
      %c62 = arith.constant 62 : index
      %178 = memref.load %arg3[%c62] : memref<98xf32, #tpu.memory_space<smem>>
      %179 = vector.extract_strided_slice %112 {offsets = [0, 6], sizes = [2, 256], strides = [1, 1]} : vector<2x262xf32> to vector<2x256xf32>
      %180 = vector.broadcast %178 : f32 to vector<2x256xf32>
      %181 = arith.mulf %180, %179 : vector<2x256xf32>
      %182 = arith.addf %177, %181 : vector<2x256xf32>
      %c0_28 = arith.constant 0 : index
      %c109 = arith.constant 109 : index
      %183 = vector.load %arg6[%c0_28, %c109] : memref<2x435xf32, #tpu.memory_space<vmem>>, vector<2x262xf32>
      %c0_29 = arith.constant 0 : index
      %c109_30 = arith.constant 109 : index
      %184 = vector.load %arg7[%c0_29, %c109_30] : memref<2x435xf32, #tpu.memory_space<vmem>>, vector<2x262xf32>
      %c14 = arith.constant 14 : index
      %185 = memref.load %arg3[%c14] : memref<98xf32, #tpu.memory_space<smem>>
      %186 = vector.extract_strided_slice %183 {offsets = [0, 0], sizes = [2, 256], strides = [1, 1]} : vector<2x262xf32> to vector<2x256xf32>
      %187 = vector.broadcast %185 : f32 to vector<2x256xf32>
      %188 = arith.mulf %187, %186 : vector<2x256xf32>
      %189 = arith.addf %122, %188 : vector<2x256xf32>
      %c63 = arith.constant 63 : index
      %190 = memref.load %arg3[%c63] : memref<98xf32, #tpu.memory_space<smem>>
      %191 = vector.extract_strided_slice %184 {offsets = [0, 0], sizes = [2, 256], strides = [1, 1]} : vector<2x262xf32> to vector<2x256xf32>
      %192 = vector.broadcast %190 : f32 to vector<2x256xf32>
      %193 = arith.mulf %192, %191 : vector<2x256xf32>
      %194 = arith.addf %189, %193 : vector<2x256xf32>
      %c15 = arith.constant 15 : index
      %195 = memref.load %arg3[%c15] : memref<98xf32, #tpu.memory_space<smem>>
      %196 = vector.extract_strided_slice %183 {offsets = [0, 1], sizes = [2, 256], strides = [1, 1]} : vector<2x262xf32> to vector<2x256xf32>
      %197 = vector.broadcast %195 : f32 to vector<2x256xf32>
      %198 = arith.mulf %197, %196 : vector<2x256xf32>
      %199 = arith.addf %132, %198 : vector<2x256xf32>
      %c64 = arith.constant 64 : index
      %200 = memref.load %arg3[%c64] : memref<98xf32, #tpu.memory_space<smem>>
      %201 = vector.extract_strided_slice %184 {offsets = [0, 1], sizes = [2, 256], strides = [1, 1]} : vector<2x262xf32> to vector<2x256xf32>
      %202 = vector.broadcast %200 : f32 to vector<2x256xf32>
      %203 = arith.mulf %202, %201 : vector<2x256xf32>
      %204 = arith.addf %199, %203 : vector<2x256xf32>
      %c16 = arith.constant 16 : index
      %205 = memref.load %arg3[%c16] : memref<98xf32, #tpu.memory_space<smem>>
      %206 = vector.extract_strided_slice %183 {offsets = [0, 2], sizes = [2, 256], strides = [1, 1]} : vector<2x262xf32> to vector<2x256xf32>
      %207 = vector.broadcast %205 : f32 to vector<2x256xf32>
      %208 = arith.mulf %207, %206 : vector<2x256xf32>
      %209 = arith.addf %142, %208 : vector<2x256xf32>
      %c65 = arith.constant 65 : index
      %210 = memref.load %arg3[%c65] : memref<98xf32, #tpu.memory_space<smem>>
      %211 = vector.extract_strided_slice %184 {offsets = [0, 2], sizes = [2, 256], strides = [1, 1]} : vector<2x262xf32> to vector<2x256xf32>
      %212 = vector.broadcast %210 : f32 to vector<2x256xf32>
      %213 = arith.mulf %212, %211 : vector<2x256xf32>
      %214 = arith.addf %209, %213 : vector<2x256xf32>
      %c17 = arith.constant 17 : index
      %215 = memref.load %arg3[%c17] : memref<98xf32, #tpu.memory_space<smem>>
      %216 = vector.extract_strided_slice %183 {offsets = [0, 3], sizes = [2, 256], strides = [1, 1]} : vector<2x262xf32> to vector<2x256xf32>
      %217 = vector.broadcast %215 : f32 to vector<2x256xf32>
      %218 = arith.mulf %217, %216 : vector<2x256xf32>
      %219 = arith.addf %152, %218 : vector<2x256xf32>
      %c66 = arith.constant 66 : index
      %220 = memref.load %arg3[%c66] : memref<98xf32, #tpu.memory_space<smem>>
      %221 = vector.extract_strided_slice %184 {offsets = [0, 3], sizes = [2, 256], strides = [1, 1]} : vector<2x262xf32> to vector<2x256xf32>
      %222 = vector.broadcast %220 : f32 to vector<2x256xf32>
      %223 = arith.mulf %222, %221 : vector<2x256xf32>
      %224 = arith.addf %219, %223 : vector<2x256xf32>
      %c18 = arith.constant 18 : index
      %225 = memref.load %arg3[%c18] : memref<98xf32, #tpu.memory_space<smem>>
      %226 = vector.extract_strided_slice %183 {offsets = [0, 4], sizes = [2, 256], strides = [1, 1]} : vector<2x262xf32> to vector<2x256xf32>
      %227 = vector.broadcast %225 : f32 to vector<2x256xf32>
      %228 = arith.mulf %227, %226 : vector<2x256xf32>
      %229 = arith.addf %162, %228 : vector<2x256xf32>
      %c67 = arith.constant 67 : index
      %230 = memref.load %arg3[%c67] : memref<98xf32, #tpu.memory_space<smem>>
      %231 = vector.extract_strided_slice %184 {offsets = [0, 4], sizes = [2, 256], strides = [1, 1]} : vector<2x262xf32> to vector<2x256xf32>
      %232 = vector.broadcast %230 : f32 to vector<2x256xf32>
      %233 = arith.mulf %232, %231 : vector<2x256xf32>
      %234 = arith.addf %229, %233 : vector<2x256xf32>
      %c19 = arith.constant 19 : index
      %235 = memref.load %arg3[%c19] : memref<98xf32, #tpu.memory_space<smem>>
      %236 = vector.extract_strided_slice %183 {offsets = [0, 5], sizes = [2, 256], strides = [1, 1]} : vector<2x262xf32> to vector<2x256xf32>
      %237 = vector.broadcast %235 : f32 to vector<2x256xf32>
      %238 = arith.mulf %237, %236 : vector<2x256xf32>
      %239 = arith.addf %172, %238 : vector<2x256xf32>
      %c68 = arith.constant 68 : index
      %240 = memref.load %arg3[%c68] : memref<98xf32, #tpu.memory_space<smem>>
      %241 = vector.extract_strided_slice %184 {offsets = [0, 5], sizes = [2, 256], strides = [1, 1]} : vector<2x262xf32> to vector<2x256xf32>
      %242 = vector.broadcast %240 : f32 to vector<2x256xf32>
      %243 = arith.mulf %242, %241 : vector<2x256xf32>
      %244 = arith.addf %239, %243 : vector<2x256xf32>
      %c20 = arith.constant 20 : index
      %245 = memref.load %arg3[%c20] : memref<98xf32, #tpu.memory_space<smem>>
      %246 = vector.extract_strided_slice %183 {offsets = [0, 6], sizes = [2, 256], strides = [1, 1]} : vector<2x262xf32> to vector<2x256xf32>
      %247 = vector.broadcast %245 : f32 to vector<2x256xf32>
      %248 = arith.mulf %247, %246 : vector<2x256xf32>
      %249 = arith.addf %182, %248 : vector<2x256xf32>
      %c69 = arith.constant 69 : index
      %250 = memref.load %arg3[%c69] : memref<98xf32, #tpu.memory_space<smem>>
      %251 = vector.extract_strided_slice %184 {offsets = [0, 6], sizes = [2, 256], strides = [1, 1]} : vector<2x262xf32> to vector<2x256xf32>
      %252 = vector.broadcast %250 : f32 to vector<2x256xf32>
      %253 = arith.mulf %252, %251 : vector<2x256xf32>
      %254 = arith.addf %249, %253 : vector<2x256xf32>
      %c0_31 = arith.constant 0 : index
      %c125 = arith.constant 125 : index
      %255 = vector.load %arg6[%c0_31, %c125] : memref<2x435xf32, #tpu.memory_space<vmem>>, vector<2x262xf32>
      %c0_32 = arith.constant 0 : index
      %c125_33 = arith.constant 125 : index
      %256 = vector.load %arg7[%c0_32, %c125_33] : memref<2x435xf32, #tpu.memory_space<vmem>>, vector<2x262xf32>
      %c21 = arith.constant 21 : index
      %257 = memref.load %arg3[%c21] : memref<98xf32, #tpu.memory_space<smem>>
      %258 = vector.extract_strided_slice %255 {offsets = [0, 0], sizes = [2, 256], strides = [1, 1]} : vector<2x262xf32> to vector<2x256xf32>
      %259 = vector.broadcast %257 : f32 to vector<2x256xf32>
      %260 = arith.mulf %259, %258 : vector<2x256xf32>
      %261 = arith.addf %194, %260 : vector<2x256xf32>
      %c70 = arith.constant 70 : index
      %262 = memref.load %arg3[%c70] : memref<98xf32, #tpu.memory_space<smem>>
      %263 = vector.extract_strided_slice %256 {offsets = [0, 0], sizes = [2, 256], strides = [1, 1]} : vector<2x262xf32> to vector<2x256xf32>
      %264 = vector.broadcast %262 : f32 to vector<2x256xf32>
      %265 = arith.mulf %264, %263 : vector<2x256xf32>
      %266 = arith.addf %261, %265 : vector<2x256xf32>
      %c22 = arith.constant 22 : index
      %267 = memref.load %arg3[%c22] : memref<98xf32, #tpu.memory_space<smem>>
      %268 = vector.extract_strided_slice %255 {offsets = [0, 1], sizes = [2, 256], strides = [1, 1]} : vector<2x262xf32> to vector<2x256xf32>
      %269 = vector.broadcast %267 : f32 to vector<2x256xf32>
      %270 = arith.mulf %269, %268 : vector<2x256xf32>
      %271 = arith.addf %204, %270 : vector<2x256xf32>
      %c71 = arith.constant 71 : index
      %272 = memref.load %arg3[%c71] : memref<98xf32, #tpu.memory_space<smem>>
      %273 = vector.extract_strided_slice %256 {offsets = [0, 1], sizes = [2, 256], strides = [1, 1]} : vector<2x262xf32> to vector<2x256xf32>
      %274 = vector.broadcast %272 : f32 to vector<2x256xf32>
      %275 = arith.mulf %274, %273 : vector<2x256xf32>
      %276 = arith.addf %271, %275 : vector<2x256xf32>
      %c23 = arith.constant 23 : index
      %277 = memref.load %arg3[%c23] : memref<98xf32, #tpu.memory_space<smem>>
      %278 = vector.extract_strided_slice %255 {offsets = [0, 2], sizes = [2, 256], strides = [1, 1]} : vector<2x262xf32> to vector<2x256xf32>
      %279 = vector.broadcast %277 : f32 to vector<2x256xf32>
      %280 = arith.mulf %279, %278 : vector<2x256xf32>
      %281 = arith.addf %214, %280 : vector<2x256xf32>
      %c72 = arith.constant 72 : index
      %282 = memref.load %arg3[%c72] : memref<98xf32, #tpu.memory_space<smem>>
      %283 = vector.extract_strided_slice %256 {offsets = [0, 2], sizes = [2, 256], strides = [1, 1]} : vector<2x262xf32> to vector<2x256xf32>
      %284 = vector.broadcast %282 : f32 to vector<2x256xf32>
      %285 = arith.mulf %284, %283 : vector<2x256xf32>
      %286 = arith.addf %281, %285 : vector<2x256xf32>
      %c24 = arith.constant 24 : index
      %287 = memref.load %arg3[%c24] : memref<98xf32, #tpu.memory_space<smem>>
      %288 = vector.extract_strided_slice %255 {offsets = [0, 3], sizes = [2, 256], strides = [1, 1]} : vector<2x262xf32> to vector<2x256xf32>
      %289 = vector.broadcast %287 : f32 to vector<2x256xf32>
      %290 = arith.mulf %289, %288 : vector<2x256xf32>
      %291 = arith.addf %224, %290 : vector<2x256xf32>
      %c73 = arith.constant 73 : index
      %292 = memref.load %arg3[%c73] : memref<98xf32, #tpu.memory_space<smem>>
      %293 = vector.extract_strided_slice %256 {offsets = [0, 3], sizes = [2, 256], strides = [1, 1]} : vector<2x262xf32> to vector<2x256xf32>
      %294 = vector.broadcast %292 : f32 to vector<2x256xf32>
      %295 = arith.mulf %294, %293 : vector<2x256xf32>
      %296 = arith.addf %291, %295 : vector<2x256xf32>
      %c25 = arith.constant 25 : index
      %297 = memref.load %arg3[%c25] : memref<98xf32, #tpu.memory_space<smem>>
      %298 = vector.extract_strided_slice %255 {offsets = [0, 4], sizes = [2, 256], strides = [1, 1]} : vector<2x262xf32> to vector<2x256xf32>
      %299 = vector.broadcast %297 : f32 to vector<2x256xf32>
      %300 = arith.mulf %299, %298 : vector<2x256xf32>
      %301 = arith.addf %234, %300 : vector<2x256xf32>
      %c74 = arith.constant 74 : index
      %302 = memref.load %arg3[%c74] : memref<98xf32, #tpu.memory_space<smem>>
      %303 = vector.extract_strided_slice %256 {offsets = [0, 4], sizes = [2, 256], strides = [1, 1]} : vector<2x262xf32> to vector<2x256xf32>
      %304 = vector.broadcast %302 : f32 to vector<2x256xf32>
      %305 = arith.mulf %304, %303 : vector<2x256xf32>
      %306 = arith.addf %301, %305 : vector<2x256xf32>
      %c26 = arith.constant 26 : index
      %307 = memref.load %arg3[%c26] : memref<98xf32, #tpu.memory_space<smem>>
      %308 = vector.extract_strided_slice %255 {offsets = [0, 5], sizes = [2, 256], strides = [1, 1]} : vector<2x262xf32> to vector<2x256xf32>
      %309 = vector.broadcast %307 : f32 to vector<2x256xf32>
      %310 = arith.mulf %309, %308 : vector<2x256xf32>
      %311 = arith.addf %244, %310 : vector<2x256xf32>
      %c75 = arith.constant 75 : index
      %312 = memref.load %arg3[%c75] : memref<98xf32, #tpu.memory_space<smem>>
      %313 = vector.extract_strided_slice %256 {offsets = [0, 5], sizes = [2, 256], strides = [1, 1]} : vector<2x262xf32> to vector<2x256xf32>
      %314 = vector.broadcast %312 : f32 to vector<2x256xf32>
      %315 = arith.mulf %314, %313 : vector<2x256xf32>
      %316 = arith.addf %311, %315 : vector<2x256xf32>
      %c27 = arith.constant 27 : index
      %317 = memref.load %arg3[%c27] : memref<98xf32, #tpu.memory_space<smem>>
      %318 = vector.extract_strided_slice %255 {offsets = [0, 6], sizes = [2, 256], strides = [1, 1]} : vector<2x262xf32> to vector<2x256xf32>
      %319 = vector.broadcast %317 : f32 to vector<2x256xf32>
      %320 = arith.mulf %319, %318 : vector<2x256xf32>
      %321 = arith.addf %254, %320 : vector<2x256xf32>
      %c76 = arith.constant 76 : index
      %322 = memref.load %arg3[%c76] : memref<98xf32, #tpu.memory_space<smem>>
      %323 = vector.extract_strided_slice %256 {offsets = [0, 6], sizes = [2, 256], strides = [1, 1]} : vector<2x262xf32> to vector<2x256xf32>
      %324 = vector.broadcast %322 : f32 to vector<2x256xf32>
      %325 = arith.mulf %324, %323 : vector<2x256xf32>
      %326 = arith.addf %321, %325 : vector<2x256xf32>
      %c0_34 = arith.constant 0 : index
      %c141 = arith.constant 141 : index
      %327 = vector.load %arg6[%c0_34, %c141] : memref<2x435xf32, #tpu.memory_space<vmem>>, vector<2x262xf32>
      %c0_35 = arith.constant 0 : index
      %c141_36 = arith.constant 141 : index
      %328 = vector.load %arg7[%c0_35, %c141_36] : memref<2x435xf32, #tpu.memory_space<vmem>>, vector<2x262xf32>
      %c28 = arith.constant 28 : index
      %329 = memref.load %arg3[%c28] : memref<98xf32, #tpu.memory_space<smem>>
      %330 = vector.extract_strided_slice %327 {offsets = [0, 0], sizes = [2, 256], strides = [1, 1]} : vector<2x262xf32> to vector<2x256xf32>
      %331 = vector.broadcast %329 : f32 to vector<2x256xf32>
      %332 = arith.mulf %331, %330 : vector<2x256xf32>
      %333 = arith.addf %266, %332 : vector<2x256xf32>
      %c77_37 = arith.constant 77 : index
      %334 = memref.load %arg3[%c77_37] : memref<98xf32, #tpu.memory_space<smem>>
      %335 = vector.extract_strided_slice %328 {offsets = [0, 0], sizes = [2, 256], strides = [1, 1]} : vector<2x262xf32> to vector<2x256xf32>
      %336 = vector.broadcast %334 : f32 to vector<2x256xf32>
      %337 = arith.mulf %336, %335 : vector<2x256xf32>
      %338 = arith.addf %333, %337 : vector<2x256xf32>
      %c29 = arith.constant 29 : index
      %339 = memref.load %arg3[%c29] : memref<98xf32, #tpu.memory_space<smem>>
      %340 = vector.extract_strided_slice %327 {offsets = [0, 1], sizes = [2, 256], strides = [1, 1]} : vector<2x262xf32> to vector<2x256xf32>
      %341 = vector.broadcast %339 : f32 to vector<2x256xf32>
      %342 = arith.mulf %341, %340 : vector<2x256xf32>
      %343 = arith.addf %276, %342 : vector<2x256xf32>
      %c78 = arith.constant 78 : index
      %344 = memref.load %arg3[%c78] : memref<98xf32, #tpu.memory_space<smem>>
      %345 = vector.extract_strided_slice %328 {offsets = [0, 1], sizes = [2, 256], strides = [1, 1]} : vector<2x262xf32> to vector<2x256xf32>
      %346 = vector.broadcast %344 : f32 to vector<2x256xf32>
      %347 = arith.mulf %346, %345 : vector<2x256xf32>
      %348 = arith.addf %343, %347 : vector<2x256xf32>
      %c30 = arith.constant 30 : index
      %349 = memref.load %arg3[%c30] : memref<98xf32, #tpu.memory_space<smem>>
      %350 = vector.extract_strided_slice %327 {offsets = [0, 2], sizes = [2, 256], strides = [1, 1]} : vector<2x262xf32> to vector<2x256xf32>
      %351 = vector.broadcast %349 : f32 to vector<2x256xf32>
      %352 = arith.mulf %351, %350 : vector<2x256xf32>
      %353 = arith.addf %286, %352 : vector<2x256xf32>
      %c79 = arith.constant 79 : index
      %354 = memref.load %arg3[%c79] : memref<98xf32, #tpu.memory_space<smem>>
      %355 = vector.extract_strided_slice %328 {offsets = [0, 2], sizes = [2, 256], strides = [1, 1]} : vector<2x262xf32> to vector<2x256xf32>
      %356 = vector.broadcast %354 : f32 to vector<2x256xf32>
      %357 = arith.mulf %356, %355 : vector<2x256xf32>
      %358 = arith.addf %353, %357 : vector<2x256xf32>
      %c31 = arith.constant 31 : index
      %359 = memref.load %arg3[%c31] : memref<98xf32, #tpu.memory_space<smem>>
      %360 = vector.extract_strided_slice %327 {offsets = [0, 3], sizes = [2, 256], strides = [1, 1]} : vector<2x262xf32> to vector<2x256xf32>
      %361 = vector.broadcast %359 : f32 to vector<2x256xf32>
      %362 = arith.mulf %361, %360 : vector<2x256xf32>
      %363 = arith.addf %296, %362 : vector<2x256xf32>
      %c80 = arith.constant 80 : index
      %364 = memref.load %arg3[%c80] : memref<98xf32, #tpu.memory_space<smem>>
      %365 = vector.extract_strided_slice %328 {offsets = [0, 3], sizes = [2, 256], strides = [1, 1]} : vector<2x262xf32> to vector<2x256xf32>
      %366 = vector.broadcast %364 : f32 to vector<2x256xf32>
      %367 = arith.mulf %366, %365 : vector<2x256xf32>
      %368 = arith.addf %363, %367 : vector<2x256xf32>
      %c32 = arith.constant 32 : index
      %369 = memref.load %arg3[%c32] : memref<98xf32, #tpu.memory_space<smem>>
      %370 = vector.extract_strided_slice %327 {offsets = [0, 4], sizes = [2, 256], strides = [1, 1]} : vector<2x262xf32> to vector<2x256xf32>
      %371 = vector.broadcast %369 : f32 to vector<2x256xf32>
      %372 = arith.mulf %371, %370 : vector<2x256xf32>
      %373 = arith.addf %306, %372 : vector<2x256xf32>
      %c81 = arith.constant 81 : index
      %374 = memref.load %arg3[%c81] : memref<98xf32, #tpu.memory_space<smem>>
      %375 = vector.extract_strided_slice %328 {offsets = [0, 4], sizes = [2, 256], strides = [1, 1]} : vector<2x262xf32> to vector<2x256xf32>
      %376 = vector.broadcast %374 : f32 to vector<2x256xf32>
      %377 = arith.mulf %376, %375 : vector<2x256xf32>
      %378 = arith.addf %373, %377 : vector<2x256xf32>
      %c33 = arith.constant 33 : index
      %379 = memref.load %arg3[%c33] : memref<98xf32, #tpu.memory_space<smem>>
      %380 = vector.extract_strided_slice %327 {offsets = [0, 5], sizes = [2, 256], strides = [1, 1]} : vector<2x262xf32> to vector<2x256xf32>
      %381 = vector.broadcast %379 : f32 to vector<2x256xf32>
      %382 = arith.mulf %381, %380 : vector<2x256xf32>
      %383 = arith.addf %316, %382 : vector<2x256xf32>
      %c82 = arith.constant 82 : index
      %384 = memref.load %arg3[%c82] : memref<98xf32, #tpu.memory_space<smem>>
      %385 = vector.extract_strided_slice %328 {offsets = [0, 5], sizes = [2, 256], strides = [1, 1]} : vector<2x262xf32> to vector<2x256xf32>
      %386 = vector.broadcast %384 : f32 to vector<2x256xf32>
      %387 = arith.mulf %386, %385 : vector<2x256xf32>
      %388 = arith.addf %383, %387 : vector<2x256xf32>
      %c34 = arith.constant 34 : index
      %389 = memref.load %arg3[%c34] : memref<98xf32, #tpu.memory_space<smem>>
      %390 = vector.extract_strided_slice %327 {offsets = [0, 6], sizes = [2, 256], strides = [1, 1]} : vector<2x262xf32> to vector<2x256xf32>
      %391 = vector.broadcast %389 : f32 to vector<2x256xf32>
      %392 = arith.mulf %391, %390 : vector<2x256xf32>
      %393 = arith.addf %326, %392 : vector<2x256xf32>
      %c83 = arith.constant 83 : index
      %394 = memref.load %arg3[%c83] : memref<98xf32, #tpu.memory_space<smem>>
      %395 = vector.extract_strided_slice %328 {offsets = [0, 6], sizes = [2, 256], strides = [1, 1]} : vector<2x262xf32> to vector<2x256xf32>
      %396 = vector.broadcast %394 : f32 to vector<2x256xf32>
      %397 = arith.mulf %396, %395 : vector<2x256xf32>
      %398 = arith.addf %393, %397 : vector<2x256xf32>
      %c0_38 = arith.constant 0 : index
      %c157 = arith.constant 157 : index
      %399 = vector.load %arg6[%c0_38, %c157] : memref<2x435xf32, #tpu.memory_space<vmem>>, vector<2x262xf32>
      %c0_39 = arith.constant 0 : index
      %c157_40 = arith.constant 157 : index
      %400 = vector.load %arg7[%c0_39, %c157_40] : memref<2x435xf32, #tpu.memory_space<vmem>>, vector<2x262xf32>
      %c35 = arith.constant 35 : index
      %401 = memref.load %arg3[%c35] : memref<98xf32, #tpu.memory_space<smem>>
      %402 = vector.extract_strided_slice %399 {offsets = [0, 0], sizes = [2, 256], strides = [1, 1]} : vector<2x262xf32> to vector<2x256xf32>
      %403 = vector.broadcast %401 : f32 to vector<2x256xf32>
      %404 = arith.mulf %403, %402 : vector<2x256xf32>
      %405 = arith.addf %338, %404 : vector<2x256xf32>
      %c84 = arith.constant 84 : index
      %406 = memref.load %arg3[%c84] : memref<98xf32, #tpu.memory_space<smem>>
      %407 = vector.extract_strided_slice %400 {offsets = [0, 0], sizes = [2, 256], strides = [1, 1]} : vector<2x262xf32> to vector<2x256xf32>
      %408 = vector.broadcast %406 : f32 to vector<2x256xf32>
      %409 = arith.mulf %408, %407 : vector<2x256xf32>
      %410 = arith.addf %405, %409 : vector<2x256xf32>
      %c36 = arith.constant 36 : index
      %411 = memref.load %arg3[%c36] : memref<98xf32, #tpu.memory_space<smem>>
      %412 = vector.extract_strided_slice %399 {offsets = [0, 1], sizes = [2, 256], strides = [1, 1]} : vector<2x262xf32> to vector<2x256xf32>
      %413 = vector.broadcast %411 : f32 to vector<2x256xf32>
      %414 = arith.mulf %413, %412 : vector<2x256xf32>
      %415 = arith.addf %348, %414 : vector<2x256xf32>
      %c85 = arith.constant 85 : index
      %416 = memref.load %arg3[%c85] : memref<98xf32, #tpu.memory_space<smem>>
      %417 = vector.extract_strided_slice %400 {offsets = [0, 1], sizes = [2, 256], strides = [1, 1]} : vector<2x262xf32> to vector<2x256xf32>
      %418 = vector.broadcast %416 : f32 to vector<2x256xf32>
      %419 = arith.mulf %418, %417 : vector<2x256xf32>
      %420 = arith.addf %415, %419 : vector<2x256xf32>
      %c37 = arith.constant 37 : index
      %421 = memref.load %arg3[%c37] : memref<98xf32, #tpu.memory_space<smem>>
      %422 = vector.extract_strided_slice %399 {offsets = [0, 2], sizes = [2, 256], strides = [1, 1]} : vector<2x262xf32> to vector<2x256xf32>
      %423 = vector.broadcast %421 : f32 to vector<2x256xf32>
      %424 = arith.mulf %423, %422 : vector<2x256xf32>
      %425 = arith.addf %358, %424 : vector<2x256xf32>
      %c86 = arith.constant 86 : index
      %426 = memref.load %arg3[%c86] : memref<98xf32, #tpu.memory_space<smem>>
      %427 = vector.extract_strided_slice %400 {offsets = [0, 2], sizes = [2, 256], strides = [1, 1]} : vector<2x262xf32> to vector<2x256xf32>
      %428 = vector.broadcast %426 : f32 to vector<2x256xf32>
      %429 = arith.mulf %428, %427 : vector<2x256xf32>
      %430 = arith.addf %425, %429 : vector<2x256xf32>
      %c38 = arith.constant 38 : index
      %431 = memref.load %arg3[%c38] : memref<98xf32, #tpu.memory_space<smem>>
      %432 = vector.extract_strided_slice %399 {offsets = [0, 3], sizes = [2, 256], strides = [1, 1]} : vector<2x262xf32> to vector<2x256xf32>
      %433 = vector.broadcast %431 : f32 to vector<2x256xf32>
      %434 = arith.mulf %433, %432 : vector<2x256xf32>
      %435 = arith.addf %368, %434 : vector<2x256xf32>
      %c87 = arith.constant 87 : index
      %436 = memref.load %arg3[%c87] : memref<98xf32, #tpu.memory_space<smem>>
      %437 = vector.extract_strided_slice %400 {offsets = [0, 3], sizes = [2, 256], strides = [1, 1]} : vector<2x262xf32> to vector<2x256xf32>
      %438 = vector.broadcast %436 : f32 to vector<2x256xf32>
      %439 = arith.mulf %438, %437 : vector<2x256xf32>
      %440 = arith.addf %435, %439 : vector<2x256xf32>
      %c39 = arith.constant 39 : index
      %441 = memref.load %arg3[%c39] : memref<98xf32, #tpu.memory_space<smem>>
      %442 = vector.extract_strided_slice %399 {offsets = [0, 4], sizes = [2, 256], strides = [1, 1]} : vector<2x262xf32> to vector<2x256xf32>
      %443 = vector.broadcast %441 : f32 to vector<2x256xf32>
      %444 = arith.mulf %443, %442 : vector<2x256xf32>
      %445 = arith.addf %378, %444 : vector<2x256xf32>
      %c88 = arith.constant 88 : index
      %446 = memref.load %arg3[%c88] : memref<98xf32, #tpu.memory_space<smem>>
      %447 = vector.extract_strided_slice %400 {offsets = [0, 4], sizes = [2, 256], strides = [1, 1]} : vector<2x262xf32> to vector<2x256xf32>
      %448 = vector.broadcast %446 : f32 to vector<2x256xf32>
      %449 = arith.mulf %448, %447 : vector<2x256xf32>
      %450 = arith.addf %445, %449 : vector<2x256xf32>
      %c40 = arith.constant 40 : index
      %451 = memref.load %arg3[%c40] : memref<98xf32, #tpu.memory_space<smem>>
      %452 = vector.extract_strided_slice %399 {offsets = [0, 5], sizes = [2, 256], strides = [1, 1]} : vector<2x262xf32> to vector<2x256xf32>
      %453 = vector.broadcast %451 : f32 to vector<2x256xf32>
      %454 = arith.mulf %453, %452 : vector<2x256xf32>
      %455 = arith.addf %388, %454 : vector<2x256xf32>
      %c89 = arith.constant 89 : index
      %456 = memref.load %arg3[%c89] : memref<98xf32, #tpu.memory_space<smem>>
      %457 = vector.extract_strided_slice %400 {offsets = [0, 5], sizes = [2, 256], strides = [1, 1]} : vector<2x262xf32> to vector<2x256xf32>
      %458 = vector.broadcast %456 : f32 to vector<2x256xf32>
      %459 = arith.mulf %458, %457 : vector<2x256xf32>
      %460 = arith.addf %455, %459 : vector<2x256xf32>
      %c41 = arith.constant 41 : index
      %461 = memref.load %arg3[%c41] : memref<98xf32, #tpu.memory_space<smem>>
      %462 = vector.extract_strided_slice %399 {offsets = [0, 6], sizes = [2, 256], strides = [1, 1]} : vector<2x262xf32> to vector<2x256xf32>
      %463 = vector.broadcast %461 : f32 to vector<2x256xf32>
      %464 = arith.mulf %463, %462 : vector<2x256xf32>
      %465 = arith.addf %398, %464 : vector<2x256xf32>
      %c90 = arith.constant 90 : index
      %466 = memref.load %arg3[%c90] : memref<98xf32, #tpu.memory_space<smem>>
      %467 = vector.extract_strided_slice %400 {offsets = [0, 6], sizes = [2, 256], strides = [1, 1]} : vector<2x262xf32> to vector<2x256xf32>
      %468 = vector.broadcast %466 : f32 to vector<2x256xf32>
      %469 = arith.mulf %468, %467 : vector<2x256xf32>
      %470 = arith.addf %465, %469 : vector<2x256xf32>
      %c0_41 = arith.constant 0 : index
      %c173 = arith.constant 173 : index
      %471 = vector.load %arg6[%c0_41, %c173] : memref<2x435xf32, #tpu.memory_space<vmem>>, vector<2x262xf32>
      %c0_42 = arith.constant 0 : index
      %c173_43 = arith.constant 173 : index
      %472 = vector.load %arg7[%c0_42, %c173_43] : memref<2x435xf32, #tpu.memory_space<vmem>>, vector<2x262xf32>
      %c42 = arith.constant 42 : index
      %473 = memref.load %arg3[%c42] : memref<98xf32, #tpu.memory_space<smem>>
      %474 = vector.extract_strided_slice %471 {offsets = [0, 0], sizes = [2, 256], strides = [1, 1]} : vector<2x262xf32> to vector<2x256xf32>
      %475 = vector.broadcast %473 : f32 to vector<2x256xf32>
      %476 = arith.mulf %475, %474 : vector<2x256xf32>
      %477 = arith.addf %410, %476 : vector<2x256xf32>
      %c91 = arith.constant 91 : index
      %478 = memref.load %arg3[%c91] : memref<98xf32, #tpu.memory_space<smem>>
      %479 = vector.extract_strided_slice %472 {offsets = [0, 0], sizes = [2, 256], strides = [1, 1]} : vector<2x262xf32> to vector<2x256xf32>
      %480 = vector.broadcast %478 : f32 to vector<2x256xf32>
      %481 = arith.mulf %480, %479 : vector<2x256xf32>
      %482 = arith.addf %477, %481 : vector<2x256xf32>
      %c43 = arith.constant 43 : index
      %483 = memref.load %arg3[%c43] : memref<98xf32, #tpu.memory_space<smem>>
      %484 = vector.extract_strided_slice %471 {offsets = [0, 1], sizes = [2, 256], strides = [1, 1]} : vector<2x262xf32> to vector<2x256xf32>
      %485 = vector.broadcast %483 : f32 to vector<2x256xf32>
      %486 = arith.mulf %485, %484 : vector<2x256xf32>
      %487 = arith.addf %420, %486 : vector<2x256xf32>
      %c92 = arith.constant 92 : index
      %488 = memref.load %arg3[%c92] : memref<98xf32, #tpu.memory_space<smem>>
      %489 = vector.extract_strided_slice %472 {offsets = [0, 1], sizes = [2, 256], strides = [1, 1]} : vector<2x262xf32> to vector<2x256xf32>
      %490 = vector.broadcast %488 : f32 to vector<2x256xf32>
      %491 = arith.mulf %490, %489 : vector<2x256xf32>
      %492 = arith.addf %487, %491 : vector<2x256xf32>
      %c44 = arith.constant 44 : index
      %493 = memref.load %arg3[%c44] : memref<98xf32, #tpu.memory_space<smem>>
      %494 = vector.extract_strided_slice %471 {offsets = [0, 2], sizes = [2, 256], strides = [1, 1]} : vector<2x262xf32> to vector<2x256xf32>
      %495 = vector.broadcast %493 : f32 to vector<2x256xf32>
      %496 = arith.mulf %495, %494 : vector<2x256xf32>
      %497 = arith.addf %430, %496 : vector<2x256xf32>
      %c93_44 = arith.constant 93 : index
      %498 = memref.load %arg3[%c93_44] : memref<98xf32, #tpu.memory_space<smem>>
      %499 = vector.extract_strided_slice %472 {offsets = [0, 2], sizes = [2, 256], strides = [1, 1]} : vector<2x262xf32> to vector<2x256xf32>
      %500 = vector.broadcast %498 : f32 to vector<2x256xf32>
      %501 = arith.mulf %500, %499 : vector<2x256xf32>
      %502 = arith.addf %497, %501 : vector<2x256xf32>
      %c45 = arith.constant 45 : index
      %503 = memref.load %arg3[%c45] : memref<98xf32, #tpu.memory_space<smem>>
      %504 = vector.extract_strided_slice %471 {offsets = [0, 3], sizes = [2, 256], strides = [1, 1]} : vector<2x262xf32> to vector<2x256xf32>
      %505 = vector.broadcast %503 : f32 to vector<2x256xf32>
      %506 = arith.mulf %505, %504 : vector<2x256xf32>
      %507 = arith.addf %440, %506 : vector<2x256xf32>
      %c94 = arith.constant 94 : index
      %508 = memref.load %arg3[%c94] : memref<98xf32, #tpu.memory_space<smem>>
      %509 = vector.extract_strided_slice %472 {offsets = [0, 3], sizes = [2, 256], strides = [1, 1]} : vector<2x262xf32> to vector<2x256xf32>
      %510 = vector.broadcast %508 : f32 to vector<2x256xf32>
      %511 = arith.mulf %510, %509 : vector<2x256xf32>
      %512 = arith.addf %507, %511 : vector<2x256xf32>
      %c46 = arith.constant 46 : index
      %513 = memref.load %arg3[%c46] : memref<98xf32, #tpu.memory_space<smem>>
      %514 = vector.extract_strided_slice %471 {offsets = [0, 4], sizes = [2, 256], strides = [1, 1]} : vector<2x262xf32> to vector<2x256xf32>
      %515 = vector.broadcast %513 : f32 to vector<2x256xf32>
      %516 = arith.mulf %515, %514 : vector<2x256xf32>
      %517 = arith.addf %450, %516 : vector<2x256xf32>
      %c95 = arith.constant 95 : index
      %518 = memref.load %arg3[%c95] : memref<98xf32, #tpu.memory_space<smem>>
      %519 = vector.extract_strided_slice %472 {offsets = [0, 4], sizes = [2, 256], strides = [1, 1]} : vector<2x262xf32> to vector<2x256xf32>
      %520 = vector.broadcast %518 : f32 to vector<2x256xf32>
      %521 = arith.mulf %520, %519 : vector<2x256xf32>
      %522 = arith.addf %517, %521 : vector<2x256xf32>
      %c47 = arith.constant 47 : index
      %523 = memref.load %arg3[%c47] : memref<98xf32, #tpu.memory_space<smem>>
      %524 = vector.extract_strided_slice %471 {offsets = [0, 5], sizes = [2, 256], strides = [1, 1]} : vector<2x262xf32> to vector<2x256xf32>
      %525 = vector.broadcast %523 : f32 to vector<2x256xf32>
      %526 = arith.mulf %525, %524 : vector<2x256xf32>
      %527 = arith.addf %460, %526 : vector<2x256xf32>
      %c96 = arith.constant 96 : index
      %528 = memref.load %arg3[%c96] : memref<98xf32, #tpu.memory_space<smem>>
      %529 = vector.extract_strided_slice %472 {offsets = [0, 5], sizes = [2, 256], strides = [1, 1]} : vector<2x262xf32> to vector<2x256xf32>
      %530 = vector.broadcast %528 : f32 to vector<2x256xf32>
      %531 = arith.mulf %530, %529 : vector<2x256xf32>
      %532 = arith.addf %527, %531 : vector<2x256xf32>
      %c48 = arith.constant 48 : index
      %533 = memref.load %arg3[%c48] : memref<98xf32, #tpu.memory_space<smem>>
      %534 = vector.extract_strided_slice %471 {offsets = [0, 6], sizes = [2, 256], strides = [1, 1]} : vector<2x262xf32> to vector<2x256xf32>
      %535 = vector.broadcast %533 : f32 to vector<2x256xf32>
      %536 = arith.mulf %535, %534 : vector<2x256xf32>
      %537 = arith.addf %470, %536 : vector<2x256xf32>
      %c97 = arith.constant 97 : index
      %538 = memref.load %arg3[%c97] : memref<98xf32, #tpu.memory_space<smem>>
      %539 = vector.extract_strided_slice %472 {offsets = [0, 6], sizes = [2, 256], strides = [1, 1]} : vector<2x262xf32> to vector<2x256xf32>
      %540 = vector.broadcast %538 : f32 to vector<2x256xf32>
      %541 = arith.mulf %540, %539 : vector<2x256xf32>
      %542 = arith.addf %537, %541 : vector<2x256xf32>
      %c3_i32 = arith.constant 3 : i32
      %543 = vector.broadcast %c3_i32 : i32 to vector<1x256xi32>
      %544 = arith.cmpi sge, %31, %543 : vector<1x256xi32>
      %c19_i32 = arith.constant 19 : i32
      %545 = vector.broadcast %c19_i32 : i32 to vector<1x256xi32>
      %546 = arith.cmpi slt, %31, %545 : vector<1x256xi32>
      %547 = arith.andi %544, %546 : vector<1x256xi1>
      %cst_45 = arith.constant 0.000000e+00 : f32
      %548 = vector.shape_cast %547 : vector<1x256xi1> to vector<1x256xi1>
      %549 = vector.broadcast %548 : vector<1x256xi1> to vector<2x256xi1>
      %550 = vector.broadcast %cst_45 : f32 to vector<2x256xf32>
      %551 = arith.select %549, %482, %550 : vector<2x256xi1>, vector<2x256xf32>
      %552 = arith.addf %512, %551 : vector<2x256xf32>
      %c2_i32 = arith.constant 2 : i32
      %553 = vector.broadcast %c2_i32 : i32 to vector<1x256xi32>
      %554 = arith.cmpi sge, %31, %553 : vector<1x256xi32>
      %c18_i32 = arith.constant 18 : i32
      %555 = vector.broadcast %c18_i32 : i32 to vector<1x256xi32>
      %556 = arith.cmpi slt, %31, %555 : vector<1x256xi32>
      %557 = arith.andi %554, %556 : vector<1x256xi1>
      %cst_46 = arith.constant 0.000000e+00 : f32
      %558 = vector.shape_cast %557 : vector<1x256xi1> to vector<1x256xi1>
      %559 = vector.broadcast %558 : vector<1x256xi1> to vector<2x256xi1>
      %560 = vector.broadcast %cst_46 : f32 to vector<2x256xf32>
      %561 = arith.select %559, %492, %560 : vector<2x256xi1>, vector<2x256xf32>
      %562 = arith.addf %552, %561 : vector<2x256xf32>
      %c1_i32_47 = arith.constant 1 : i32
      %563 = vector.broadcast %c1_i32_47 : i32 to vector<1x256xi32>
      %564 = arith.cmpi sge, %31, %563 : vector<1x256xi32>
      %c17_i32 = arith.constant 17 : i32
      %565 = vector.broadcast %c17_i32 : i32 to vector<1x256xi32>
      %566 = arith.cmpi slt, %31, %565 : vector<1x256xi32>
      %567 = arith.andi %564, %566 : vector<1x256xi1>
      %cst_48 = arith.constant 0.000000e+00 : f32
      %568 = vector.shape_cast %567 : vector<1x256xi1> to vector<1x256xi1>
      %569 = vector.broadcast %568 : vector<1x256xi1> to vector<2x256xi1>
      %570 = vector.broadcast %cst_48 : f32 to vector<2x256xf32>
      %571 = arith.select %569, %502, %570 : vector<2x256xi1>, vector<2x256xf32>
      %572 = arith.addf %562, %571 : vector<2x256xf32>
      %c-1_i32 = arith.constant -1 : i32
      %573 = vector.broadcast %c-1_i32 : i32 to vector<1x256xi32>
      %574 = arith.cmpi sge, %31, %573 : vector<1x256xi32>
      %c15_i32 = arith.constant 15 : i32
      %575 = vector.broadcast %c15_i32 : i32 to vector<1x256xi32>
      %576 = arith.cmpi slt, %31, %575 : vector<1x256xi32>
      %577 = arith.andi %574, %576 : vector<1x256xi1>
      %cst_49 = arith.constant 0.000000e+00 : f32
      %578 = vector.shape_cast %577 : vector<1x256xi1> to vector<1x256xi1>
      %579 = vector.broadcast %578 : vector<1x256xi1> to vector<2x256xi1>
      %580 = vector.broadcast %cst_49 : f32 to vector<2x256xf32>
      %581 = arith.select %579, %522, %580 : vector<2x256xi1>, vector<2x256xf32>
      %582 = arith.addf %572, %581 : vector<2x256xf32>
      %c-2_i32 = arith.constant -2 : i32
      %583 = vector.broadcast %c-2_i32 : i32 to vector<1x256xi32>
      %584 = arith.cmpi sge, %31, %583 : vector<1x256xi32>
      %c14_i32 = arith.constant 14 : i32
      %585 = vector.broadcast %c14_i32 : i32 to vector<1x256xi32>
      %586 = arith.cmpi slt, %31, %585 : vector<1x256xi32>
      %587 = arith.andi %584, %586 : vector<1x256xi1>
      %cst_50 = arith.constant 0.000000e+00 : f32
      %588 = vector.shape_cast %587 : vector<1x256xi1> to vector<1x256xi1>
      %589 = vector.broadcast %588 : vector<1x256xi1> to vector<2x256xi1>
      %590 = vector.broadcast %cst_50 : f32 to vector<2x256xf32>
      %591 = arith.select %589, %532, %590 : vector<2x256xi1>, vector<2x256xf32>
      %592 = arith.addf %582, %591 : vector<2x256xf32>
      %c-3_i32 = arith.constant -3 : i32
      %593 = vector.broadcast %c-3_i32 : i32 to vector<1x256xi32>
      %594 = arith.cmpi sge, %31, %593 : vector<1x256xi32>
      %c13_i32 = arith.constant 13 : i32
      %595 = vector.broadcast %c13_i32 : i32 to vector<1x256xi32>
      %596 = arith.cmpi slt, %31, %595 : vector<1x256xi32>
      %597 = arith.andi %594, %596 : vector<1x256xi1>
      %cst_51 = arith.constant 0.000000e+00 : f32
      %598 = vector.shape_cast %597 : vector<1x256xi1> to vector<1x256xi1>
      %599 = vector.broadcast %598 : vector<1x256xi1> to vector<2x256xi1>
      %600 = vector.broadcast %cst_51 : f32 to vector<2x256xf32>
      %601 = arith.select %599, %542, %600 : vector<2x256xi1>, vector<2x256xf32>
      %602 = arith.addf %592, %601 : vector<2x256xf32>
      %603 = vector.broadcast %12 : f32 to vector<2x256xf32>
      %604 = arith.addf %602, %603 : vector<2x256xf32>
      %605 = arith.negf %604 : vector<2x256xf32>
      %606 = math.exp %605 : vector<2x256xf32>
      %cst_52 = arith.constant 1.000000e+00 : f32
      %607 = vector.broadcast %cst_52 : f32 to vector<2x256xf32>
      %608 = arith.addf %607, %606 : vector<2x256xf32>
      %609 = arith.divf %607, %608 : vector<2x256xf32>
      %c0_53 = arith.constant 0 : index
      %c0_54 = arith.constant 0 : index
      %c0_55 = arith.constant 0 : index
      %610 = vector.load %arg5[%c0_53, %c0_54, %c0_55] : memref<1x2x256xf32, #tpu.memory_space<vmem>>, vector<1x2x256xf32>
      %611 = vector.shape_cast %610 : vector<1x2x256xf32> to vector<2x256xf32>
      %612 = vector.shape_cast %609 : vector<2x256xf32> to vector<1x2x256xf32>
      tpu.vector_store %arg5[%c0_53, %c0_54, %c0_55], %612 {strides = array<i32>} : memref<1x2x256xf32, #tpu.memory_space<vmem>>, vector<1x2x256xf32>,
    } else {
    }
    return
  }
  func.func @transform_0(%arg0: i32, %arg1: i32) -> (i32, i32, i32) {
    %c0_i32 = arith.constant 0 : i32
    %c0_i32_0 = arith.constant 0 : i32
    return %arg0, %arg1, %c0_i32 : i32, i32, i32
  }
  func.func @transform_1(%arg0: i32, %arg1: i32) -> i32 {
    %c0_i32 = arith.constant 0 : i32
    %c0_i32_0 = arith.constant 0 : i32
    return %c0_i32 : i32
  }
  func.func @transform_2(%arg0: i32, %arg1: i32) -> i32 {
    %c0_i32 = arith.constant 0 : i32
    %c0_i32_0 = arith.constant 0 : i32
    return %c0_i32 : i32
  }
  func.func @transform_3(%arg0: i32, %arg1: i32) -> (i32, i32, i32) {
    %c0_i32 = arith.constant 0 : i32
    %c0_i32_0 = arith.constant 0 : i32
    %c0_i32_1 = arith.constant 0 : i32
    return %arg0, %c0_i32, %c0_i32_0 : i32, i32, i32
  }
}

</mosaic_0001>

<bundles_post_ra>
// kernel: tpu_custom_call.1
= control target key start
LH: loop header
LB: loop body
LE: loop exit
PB: predicated region body
PF: predicated region fallthrough
CT: control target
= control target key end

     0   :  { %9 = vsyncpa [#allocation6], 0  ;;  %s2469_s0 = inlined_call_operand.hbm [shape: f32[2,4,256], index: 0, kind: input, shape index: {}]   ;;  %s2470_s1 = inlined_call_operand.vmem [shape: f32[98], index: 1, kind: input, shape index: {}]   ;;  %s2471_s2 = inlined_call_operand.<no memory space> [shape: f32[1], index: 2, kind: input, shape index: {}]   ;;  %s2472_s3 = inlined_call_operand.hbm [shape: f32[1,2,256], index: 3, kind: output, shape index: {}]  }
   0x1   :  { %10 = vsyncpa [#allocation8], 0 }
   0x2   :  { %11 = vsyncpa [#allocation7], 0  ;;  %s1804_s12 = smov [#allocation5]   ;;  %s30_s16 = sshll.u32 %s2470_s1, 4  ;;  %s31_s16 = int_to_ptr.vmem [resolvable:$true] %s30_s16 }
   0x3   :  { %s17_s13 = sshll.u32 %s1804_s12, 4  ;;  %s1742_s19 = scalar_lea.hbm %s2469_s0, 256  ;;  %s18_s13 = int_to_ptr.vmem [resolvable:$true] %s17_s13 }
   0x4   :  { %p1743_p0 = scmp.ne.s32.totalorder %s2469_s0, %s1742_s19  ;;  %p1746_p1 = scmp.lt.u32.totalorder %s1742_s19, %s2469_s0 }
   0x6   :  { %p1748_p2 = pnand %p1746_p1, %p1743_p0 }
   0x8   :  { %1751 = shalt.err (!%p1748_p2)
}
   0x9   :  { %s1752_s24 = scalar_lea.vmem %s18_s13, 256  ;;  %p1757_p4 = scmp.lt.s32.totalorder %s18_s13, %s18_s13 }
   0xa   :  { %p1753_p3 = scmp.ne.s32.totalorder %s18_s13, %s1752_s24  ;;  %p1758_p5 = scmp.lt.s32.totalorder %s1752_s24, %s1752_s24 }
   0xc   :  { %p1759_p6 = por %p1758_p5, %p1757_p4 }
   0xe   :  { %p1760_p7 = pnand %p1759_p6, %p1753_p3 }
  0x10   :  { %1763 = shalt.err (!%p1760_p7)
}
  0x11   :  { %s1805_s1 = smov 128   ;;  %s1806_s25 = smov 8  }
  0x12   :  { %23 = dma.hbm_to_vmem [thread:$0]  %s2469_s0, 256, %s18_s13, [#allocation6], %s1805_s1, %s1805_s1, %s1806_s25  }
  0x13   :  { %s1764_s28 = scalar_lea.vmem %s31_s16, 16  ;;  %p1769_p9 = scmp.lt.s32.totalorder %s31_s16, %s31_s16 }
  0x14   :  { %p1765_p8 = scmp.ne.s32.totalorder %s31_s16, %s1764_s28  ;;  %p1770_p10 = scmp.lt.s32.totalorder %s1764_s28, %s1764_s28 }
  0x16   :  { %p1771_p11 = por %p1770_p10, %p1769_p9 }
  0x18   :  { %p1772_p12 = pnand %p1771_p11, %p1765_p8 }
  0x1a   :  { %1775 = shalt.err (!%p1772_p12)
}
  0x1b   :  { %s1807_s29 = smov [#allocation9]  }
  0x1c   :  { %33 = dma.vmem_to_smem %s31_s16, 16, %s1807_s29, [#allocation8]  }
  0x1d   :  { %1798 = dma.done.wait [#allocation6], 256  }
  0x1e   :  { %1799 = vsyncadd [#allocation6], 4294967040 }
  0x1f   :  { %1800 = dma.done.wait [#allocation8], 16  }
  0x20   :  { %1801 = vsyncadd [#allocation8], 4294967280 }
  0x21   :  { %42 = sfence }
  0x22   :  { %v43_v0 = vld [vmem:[#allocation5] sm:$0xff]  ;;  %v44_v1 = vld [vmem:[#allocation5 + $0x8] sm:$0xff]  ;;  %vm51_vm0 = vcmask 1043456   ;;  %vm114_vm1 = vcmask 410624   ;;  %v125_v2 = vlaneseq  ;;  %v1808_v7 = vmov 0.0   ;;  %s1810_s0 = smov 126  }
  0x23   :  { %v47_v3 = vcombine.high %v43_v0, %v43_v0  ;;  %v48_v4 = vcombine.high %v44_v1, %v44_v1  ;;  %v52_v5 = vsel %vm51_vm0, %v43_v0, -inf  ;;  %v66_v6 = vsel %vm51_vm0, %v44_v1, -inf  ;;  %112 = vst [vmem:[#allocation2] sm:$0x3] %v1808_v7  ;;  %115 = vst.msk [vmem:[#allocation2 + $0x6] sm:$0x3] %vm114_vm1, %v1808_v7 }
  0x24   :  { %113 = vst [vmem:[#allocation3] sm:$0x3] %v1808_v7  ;;  %116 = vst.msk [vmem:[#allocation3 + $0x6] sm:$0x3] %vm114_vm1, %v1808_v7  ;;  %v53_v8 = vrot.slane %v52_v5, 4  ;;  %v67_v9 = vrot.slane %v66_v6, 4 }
  0x25   :  { %v59_v10 = vsel %vm51_vm0, %v47_v3, -inf  ;;  %v73_v11 = vsel %vm51_vm0, %v48_v4, -inf  ;;  %v1809_v12 = vmov 1983009808   ;;  %v126_v18 = vshrl.u32 %v125_v2, 7  ;;  %s1811_s30 = smov 127  }
  0x26   :  { %v123_v13 = vunpack.c.l.s4 %v1809_v12  ;;  %v54_v14 = vmax.f32 %v52_v5, %v53_v8  ;;  %v60_v15 = vrot.slane %v59_v10, 4  ;;  %v68_v16 = vmax.f32 %v66_v6, %v67_v9  ;;  %s1621_s4 = sld [smem:[#allocation9 + $0x38]]  ;;  %s1620_s5 = sld [smem:[#allocation9 + $0x7]] }
  0x27   :  { %v74_v17 = vrot.slane %v73_v11, 4  ;;  %v80_v24 = vsel %vm51_vm0, %v43_v0, 0.0  ;;  %v87_v25 = vsel %vm51_vm0, %v47_v3, 0.0  ;;  %v94_v26 = vsel %vm51_vm0, %v44_v1, 0.0  ;;  %s1623_s6 = sld [smem:[#allocation9 + $0x39]]  ;;  %s1622_s7 = sld [smem:[#allocation9 + $0x8]] }
  0x28   :  { %v55_v19 = vrot.slane %v54_v14, 2  ;;  %v61_v20 = vmax.f32 %v59_v10, %v60_v15  ;;  %v69_v21 = vrot.slane %v68_v16, 2  ;;  %v124_v23 = vunpack.c.0.s8 %v123_v13  ;;  %s1634_s8 = sld [smem:[#allocation9 + $0xe]]  ;;  %s1624_s9 = sld [smem:[#allocation9 + $0x9]] }
  0x29   :  { %v75_v22 = vmax.f32 %v73_v11, %v74_v17  ;;  %v81_v31 = vrot.slane %v80_v24, 4  ;;  %v88_v32 = vrot.slane %v87_v25, 4  ;;  %v95_v33 = vrot.slane %v94_v26, 4  ;;  %s1812_s10 = smov 125   ;;  %s1628_s11 = sld [smem:[#allocation9 + $0xb]] }
  0x2a   :  { %v56_v27 = vmax.f32 %v54_v14, %v55_v19  ;;  %v62_v28 = vrot.slane %v61_v20, 2  ;;  %v70_v29 = vmax.f32 %v68_v16, %v69_v21  ;;  %v101_v34 = vsel %vm51_vm0, %v48_v4, 0.0  ;;  %s1625_s12 = sld [smem:[#allocation9 + $0x3a]]  ;;  %s1813_s13 = smov 112  }
  0x2b   :  { %v76_v30 = vrot.slane %v75_v22, 2  ;;  %v82_v39 = vadd.f32 %v81_v31, %v80_v24  ;;  %v89_v40 = vadd.f32 %v88_v32, %v87_v25  ;;  %v96_v41 = vadd.f32 %v95_v33, %v94_v26  ;;  %s1636_s14 = sld [smem:[#allocation9 + $0xf]]  ;;  %s1630_s16 = sld [smem:[#allocation9 + $0xc]] }
  0x2c   :  { %v57_v35 = vrot.slane %v56_v27, 1  ;;  %v63_v36 = vmax.f32 %v61_v20, %v62_v28  ;;  %v71_v37 = vrot.slane %v70_v29, 1  ;;  %v102_v42 = vrot.slane %v101_v34, 4  ;;  %s1635_s15 = sld [smem:[#allocation9 + $0x3f]]  ;;  %s1629_s17 = sld [smem:[#allocation9 + $0x3c]] }
  0x2d   :  { %v77_v38 = vmax.f32 %v75_v22, %v76_v30  ;;  %v83_v47 = vrot.slane %v82_v39, 2  ;;  %v90_v48 = vrot.slane %v89_v40, 2  ;;  %v97_v49 = vrot.slane %v96_v41, 2  ;;  %s1814_s18 = smov 96   ;;  %s1638_s19 = sld [smem:[#allocation9 + $0x10]] }
  0x2e   :  { %v58_v43 = vmax.f32 %v56_v27, %v57_v35  ;;  %v64_v44 = vrot.slane %v63_v36, 1  ;;  %v72_v45 = vmax.f32 %v70_v29, %v71_v37  ;;  %v103_v50 = vadd.f32 %v102_v42, %v101_v34  ;;  %s1637_s20 = sld [smem:[#allocation9 + $0x40]]  ;;  %s1631_s21 = sld [smem:[#allocation9 + $0x3d]] }
  0x2f   :  { %v78_v46 = vrot.slane %v77_v38, 1  ;;  %v1873_v53 = vsub.s32 %v124_v23, %v126_v18  ;;  %v84_v54 = vadd.f32 %v83_v47, %v82_v39  ;;  %v91_v55 = vadd.f32 %v90_v48, %v89_v40  ;;  %s1648_s22 = sld [smem:[#allocation9 + $0x15]]  ;;  %s1639_s23 = sld [smem:[#allocation9 + $0x41]] }
  0x30   :  { %v65_v51 = vmax.f32 %v63_v36, %v64_v44  ;;  %v98_v56 = vadd.f32 %v97_v49, %v96_v41  ;;  %v104_v57 = vrot.slane %v103_v50, 2  ;;  %vm142_vm2 = vcmask 1041409   ;;  %s1632_s24 = sld [smem:[#allocation9 + $0xd]]  ;;  %s1649_s1 = sld [smem:[#allocation9 + $0x46]] }
  0x31   :  { %v79_v52 = vmax.f32 %v77_v38, %v78_v46  ;;  %v85_v60 = vrot.slane %v84_v54, 1  ;;  %v92_v61 = vrot.slane %v91_v55, 1  ;;  %vm144_vm3 = vcmask 1043459   ;;  %s1642_s25 = sld [smem:[#allocation9 + $0x12]]  ;;  %s1633_s26 = sld [smem:[#allocation9 + $0x3e]] }
  0x32   :  { %v121_v58 = vcombine.low %v58_v43, %v65_v51  ;;  %v99_v62 = vrot.slane %v98_v56, 1  ;;  %v105_v63 = vadd.f32 %v104_v57, %v103_v50  ;;  %vm146_vm4 = vcmask 1045509   ;;  %s1650_s27 = sld [smem:[#allocation9 + $0x16]]  ;;  %s1815_s28 = smov 80  }
  0x33   :  { %v129_v59 = vcombine.low %v72_v45, %v79_v52  ;;  %v86_v3 = vadd.f32 %v85_v60, %v84_v54  ;;  %v93_v4 = vadd.f32 %v92_v61, %v91_v55  ;;  %vm148_vm5 = vcmask 1047559   ;;  %s1644_s29 = sld [smem:[#allocation9 + $0x13]] }
  0x34   :  { %v128_v0 = vrot.slane %v121_v58, %v1873_v53  ;;  %v100_v5 = vadd.f32 %v99_v62, %v98_v56  ;;  %v106_v6 = vrot.slane %v105_v63, 1  ;;  %v354_v26 = vstv %s1621_s4  ;;  %s1651_s4 = sld [smem:[#allocation9 + $0x47]] }
  0x35   :  { %v136_v1 = vrot.slane %v129_v59, %v1873_v53  ;;  %v156_v9 = vcombine.low %v86_v3, %v93_v4  ;;  %v343_v27 = vstv %s1620_s5  ;;  %v374_v30 = vstv %s1623_s6  ;;  %s1645_s5 = sld [smem:[#allocation9 + $0x44]] }
  0x36   :  { %v107_v8 = vadd.f32 %v106_v6, %v105_v63  ;;  %v364_v31 = vstv %s1622_s7  ;;  %v484_v34 = vstv %s1634_s8  ;;  %v384_v35 = vstv %s1624_s9  ;;  %s1662_s6 = sld [smem:[#allocation9 + $0x1c]]  ;;  %s1653_s7 = sld [smem:[#allocation9 + $0x48]] }
  0x37   :  { %v141_v7 = vrot.slane %v136_v1, 7  ;;  %v163_v15 = vrot.slane %v156_v9, %v1873_v53  ;;  %v424_v38 = vstv %s1628_s11  ;;  %v394_v39 = vstv %s1625_s12  ;;  %s1646_s8 = sld [smem:[#allocation9 + $0x14]]  ;;  %s1663_s9 = sld [smem:[#allocation9 + $0x4d]] }
  0x38   :  { %v164_v12 = vcombine.low %v100_v5, %v107_v8  ;;  %v505_v42 = vstv %s1636_s14  ;;  %v495_v43 = vstv %s1635_s15  ;;  %v444_v46 = vstv %s1630_s16  ;;  %s1647_s11 = sld [smem:[#allocation9 + $0x45]]  ;;  %s1665_s12 = sld [smem:[#allocation9 + $0x4e]] }
  0x39   :  { %v143_v10 = vsel %vm142_vm2, %v141_v7, %v128_v0  ;;  %v434_v47 = vstv %s1629_s17  ;;  %v525_v50 = vstv %s1638_s19  ;;  %v515_v51 = vstv %s1637_s20  ;;  %s1816_s14 = smov 64   ;;  %s1666_s15 = sld [smem:[#allocation9 + $0x1e]] }
  0x3a   :  { %v145_v11 = vsel %vm144_vm3, %v141_v7, %v143_v10  ;;  %v171_v16 = vrot.slane %v164_v12, %v1873_v53  ;;  %v454_v55 = vstv %s1631_s21  ;;  %v627_v56 = vstv %s1648_s22  ;;  %s1676_s16 = sld [smem:[#allocation9 + $0x23]]  ;;  %s1667_s17 = sld [smem:[#allocation9 + $0x4f]] }
  0x3b   :  { %v147_v13 = vsel %vm146_vm4, %v141_v7, %v145_v11  ;;  %v535_v59 = vstv %s1639_s23  ;;  %v464_v60 = vstv %s1632_s24  ;;  %v638_v63 = vstv %s1649_s1  ;;  %s1670_s19 = sld [smem:[#allocation9 + $0x20]]  ;;  %s1677_s20 = sld [smem:[#allocation9 + $0x54]] }
  0x3c   :  { %v149_v14 = vsel %vm148_vm5, %v141_v7, %v147_v13  ;;  %v174_v17 = vrot.slane %v171_v16, 7  ;;  %v565_v0 = vstv %s1642_s25  ;;  %v474_v4 = vstv %s1633_s26  ;;  %s1678_s21 = sld [smem:[#allocation9 + $0x24]]  ;;  %s1672_s22 = sld [smem:[#allocation9 + $0x21]] }
  0x3d   :  { %151 = vst [vmem:[#allocation2 + $0x2] sm:$0xf] %v149_v14  ;;  %v648_v5 = vstv %s1650_s27  ;;  %v585_v8 = vstv %s1644_s29  ;;  %v658_v13 = vstv %s1651_s4  ;;  %s1671_s23 = sld [smem:[#allocation9 + $0x51]]  ;;  %s1817_s24 = smov 48   ;;  %vm753_vm6 = vcmask 1031168  }
  0x3e   :  { %v175_v18 = vsel %vm142_vm2, %v174_v17, %v163_v15  ;;  %s1680_s1 = sld [smem:[#allocation9 + $0x25]]  ;;  %s1673_s26 = sld [smem:[#allocation9 + $0x52]]  ;;  %vm719_vm7 = vcmask 1039360   ;;  %vm787_vm8 = vcmask 1022976   ;;  %vm349_vm9 = vcmask 916480  }
  0x3f   :  { %v176_v19 = vsel %vm144_vm3, %v174_v17, %v175_v18  ;;  %v818_v18 = vstv %s1662_s6  ;;  %s1679_s25 = sld [smem:[#allocation9 + $0x55]]  ;;  %s1690_s27 = sld [smem:[#allocation9 + $0x2a]]  ;;  %vm490_vm10 = vcmask 785408   ;;  %vm633_vm11 = vcmask 654336  }
  0x40   :  { %v177_v20 = vsel %vm146_vm4, %v174_v17, %v176_v19  ;;  %s1681_s29 = sld [smem:[#allocation9 + $0x56]]  ;;  %s1684_s4 = sld [smem:[#allocation9 + $0x27]]  ;;  %vm824_vm12 = vcmask 523264   ;;  %vm965_vm13 = vcmask 392192   ;;  %vm1106_vm14 = vcmask 261120  }
  0x41   :  { %v178_v21 = vsel %vm148_vm5, %v174_v17, %v177_v20  ;;  %v595_v17 = vstv %s1645_s5  ;;  %s1675_s5 = sld [smem:[#allocation9 + $0x53]]  ;;  %vm761_vm15 = vcmask 670720   ;;  %vm727_vm0 = vcmask 662528  }
  0x42   :  { %180 = vst [vmem:[#allocation3 + $0x2] sm:$0xf] %v178_v21  ;;  %v678_v21 = vstv %s1653_s7  ;;  %s1692_s6 = sld [smem:[#allocation9 + $0x2b]]  ;;  %s1818_s7 = smov 32   ;;  %vm795_vm1 = vcmask 678912   ;;  %vm1273_vm2 = vcmask 416768  }
  0x43   :  { %vm1329_vm5 = vcmask 408576  }
  0x44   :  { %v1881_v22 = vld [vmem:[#allocation2] sm:$0xff] }
  0x45   :  { %749 = vrot.lane.b32.xlu1 %v1881_v22, %s1810_s0  ;;  %715 = vrot.lane.b32.xlu0 %v1881_v22, %s1811_s30  ;;  %v1889_v24 = vld [vmem:[#allocation2] sm:$0x3f]  ;;  %v628_v58 = vmul.f32 %v627_v56, %v1881_v22  ;;  %v649_v7 = vmul.f32 %v648_v5, %v1881_v22 }
  0x46   :  { %v344_v29 = vmul.f32 %v343_v27, %v1889_v24  ;;  %v365_v33 = vmul.f32 %v364_v31, %v1889_v24  ;;  %v485_v36 = vmul.f32 %v484_v34, %v1889_v24  ;;  %v385_v37 = vmul.f32 %v384_v35, %v1889_v24  ;;  %v1945_v16 = vld [vmem:[#allocation2 + $0x2] sm:$0x3f] }
  0x47   :  { %v425_v40 = vmul.f32 %v424_v38, %v1889_v24  ;;  %v506_v44 = vmul.f32 %v505_v42, %v1889_v24  ;;  %v445_v48 = vmul.f32 %v444_v46, %v1889_v24  ;;  %v526_v52 = vmul.f32 %v525_v50, %v1889_v24 }
  0x48   :  { %v465_v62 = vmul.f32 %v464_v60, %v1889_v24  ;;  %v566_v3 = vmul.f32 %v565_v0, %v1889_v24  ;;  %v586_v10 = vmul.f32 %v585_v8, %v1889_v24  ;;  %v819_v20 = vmul.f32 %v818_v18, %v1945_v16 }
  0x49   :  { %v1885_v23 = vld [vmem:[#allocation3] sm:$0xff]  ;;  %v849_v34 = vstv %s1665_s12  ;;  %s1688_s12 = sld [smem:[#allocation9 + $0x29]] }
  0x4a   :  { %767 = vrot.lane.b32.xlu1 %v1885_v23, %s1810_s0  ;;  %733 = vrot.lane.b32.xlu0 %v1885_v23, %s1811_s30  ;;  %v1891_v25 = vld [vmem:[#allocation3] sm:$0x3f]  ;;  %s1643_s0 = sld [smem:[#allocation9 + $0x43]]  ;;  %v639_v1 = vmul.f32 %v638_v63, %v1885_v23  ;;  %s1652_s30 = sld [smem:[#allocation9 + $0x17]]  ;;  %v659_v15 = vmul.f32 %v658_v13, %v1885_v23 }
  0x4b   :  { %v355_v28 = vmul.f32 %v354_v26, %v1891_v25  ;;  %v375_v32 = vmul.f32 %v374_v30, %v1891_v25  ;;  %v395_v41 = vmul.f32 %v394_v39, %v1891_v25  ;;  %v496_v45 = vmul.f32 %v495_v43, %v1891_v25 }
  0x4c   :  { %v435_v49 = vmul.f32 %v434_v47, %v1891_v25  ;;  %v516_v54 = vmul.f32 %v515_v51, %v1891_v25  ;;  %v455_v57 = vmul.f32 %v454_v55, %v1891_v25  ;;  %v536_v61 = vmul.f32 %v535_v59, %v1891_v25 }
  0x4d   :  { %v475_v6 = vmul.f32 %v474_v4, %v1891_v25  ;;  %v596_v19 = vmul.f32 %v595_v17, %v1891_v25  ;;  %v605_v26 = vstv %s1646_s8  ;;  %s1686_s8 = sld [smem:[#allocation9 + $0x28]] }
  0x4e   :  { %801 = vrot.lane.b32.xlu1 %v1885_v23, %s1812_s10  ;;  %783 = vrot.lane.b32.xlu0 %v1881_v22, %s1812_s10  ;;  %s1664_s10 = sld [smem:[#allocation9 + $0x1d]]  ;;  %v606_v27 = vmul.f32 %v605_v26, %v1889_v24 }
  0x50   :  { %v575_v9 = vstv %s1643_s0  ;;  %v668_v12 = vstv %s1652_s30  ;;  %s1674_s0 = sld [smem:[#allocation9 + $0x22]]  ;;  %s1691_s30 = sld [smem:[#allocation9 + $0x5b]] }
  0x51   :  { %v576_v11 = vmul.f32 %v575_v9, %v1891_v25  ;;  %v669_v14 = vmul.f32 %v668_v12, %v1881_v22  ;;  %v679_v22 = vmul.f32 %v678_v21, %v1885_v23  ;;  %v1080_v21 = vstv %s1688_s12  ;;  %s2100_s12 = sld [smem:[#allocation9 + $0x4]] }
  0x52   :  { %357 = vrot.lane.b32.xlu1 %v355_v28, %s1813_s13  ;;  %346 = vrot.lane.b32.xlu0 %v344_v29, %s1813_s13  ;;  %v1955_v28 = vld [vmem:[#allocation3 + $0x2] sm:$0x3f]  ;;  %v829_v29 = vstv %s1663_s9  ;;  %s1685_s9 = sld [smem:[#allocation9 + $0x58]] }
  0x53   :  { %v830_v31 = vmul.f32 %v829_v29, %v1955_v28  ;;  %v850_v35 = vmul.f32 %v849_v34, %v1955_v28  ;;  %v1081_v29 = vmul.f32 %v1080_v21, %v1945_v16 }
  0x54   :  { %v839_v30 = vstv %s1664_s10  ;;  %s1694_s10 = sld [smem:[#allocation9 + $0x2c]] }
  0x56   :  { %377 = vrot.lane.b32.xlu1 %v375_v32, %s1813_s13  ;;  %367 = vrot.lane.b32.xlu0 %v365_v33, %s1813_s13  ;;  %v840_v32 = vmul.f32 %v839_v30, %v1945_v16  ;;  %v615_v33 = vstv %s1647_s11  ;;  %s1693_s11 = sld [smem:[#allocation9 + $0x5c]] }
  0x57   :  { %v616_v23 = vmul.f32 %v615_v33, %v1891_v25 }
  0x5a   :  { %487 = vrot.lane.b32.xlu1 %v485_v36, %s1814_s18  ;;  %387 = vrot.lane.b32.xlu0 %v385_v37, %s1813_s13  ;;  %v859_v36 = vstv %s1666_s15  ;;  %v959_v37 = vstv %s1676_s16  ;;  %s1687_s15 = sld [smem:[#allocation9 + $0x59]]  ;;  %s1698_s16 = sld [smem:[#allocation9 + $0x2e]] }
  0x5b   :  { %v860_v38 = vmul.f32 %v859_v36, %v1945_v16  ;;  %v960_v39 = vmul.f32 %v959_v37, %v1945_v16  ;;  %v1141_v17 = vstv %s1694_s10  ;;  %s2073_s10 = sld [smem:[#allocation9 + $0x30]] }
  0x5c   :  { %v1131_v18 = vstv %s1693_s11  ;;  %s1821_s11 = smov 83  }
  0x5e   :  { %427 = vrot.lane.b32.xlu1 %v425_v40, %s1813_s13  ;;  %397 = vrot.lane.b32.xlu0 %v395_v41, %s1813_s13  ;;  %v869_v40 = vstv %s1667_s17  ;;  %v899_v41 = vstv %s1670_s19  ;;  %s1695_s17 = sld [smem:[#allocation9 + $0x5d]]  ;;  %s2009_s19 = sld [smem:[#allocation9 + $0x1a]] }
  0x5f   :  { %v870_v42 = vmul.f32 %v869_v40, %v1955_v28  ;;  %v900_v43 = vmul.f32 %v899_v41, %v1945_v16 }
  0x60   :  { %v1070_v26 = vstv %s1687_s15  ;;  %s2102_s15 = sld [smem:[#allocation9 + $0x35]] }
  0x61   :  { %v1071_v30 = vmul.f32 %v1070_v26, %v1955_v28 }
  0x62   :  { %508 = vrot.lane.b32.xlu1 %v506_v44, %s1814_s18  ;;  %498 = vrot.lane.b32.xlu0 %v496_v45, %s1814_s18  ;;  %v970_v44 = vstv %s1677_s20  ;;  %v980_v45 = vstv %s1678_s21  ;;  %s2011_s20 = sld [smem:[#allocation9 + $0x19]]  ;;  %s2017_s21 = sld [smem:[#allocation9 + $0x4b]] }
  0x63   :  { %v971_v46 = vmul.f32 %v970_v44, %v1955_v28  ;;  %v981_v47 = vmul.f32 %v980_v45, %v1945_v16 }
  0x66   :  { %447 = vrot.lane.b32.xlu1 %v445_v48, %s1813_s13  ;;  %437 = vrot.lane.b32.xlu0 %v435_v49, %s1813_s13  ;;  %v919_v48 = vstv %s1672_s22  ;;  %v909_v49 = vstv %s1671_s23  ;;  %s2019_s22 = sld [smem:[#allocation9 + $0x4a]]  ;;  %s2033_s23 = sld [smem:[#allocation9 + $0x4c]] }
  0x67   :  { %v920_v50 = vmul.f32 %v919_v48, %v1945_v16  ;;  %v910_v51 = vmul.f32 %v909_v49, %v1955_v28 }
  0x68   :  { %v714_v48 = vstv %s2011_s20  ;;  %s1607_s20 = sld [smem:[#allocation9 + $0x31]] }
  0x6a   :  { %528 = vrot.lane.b32.xlu1 %v526_v52, %s1814_s18  ;;  %518 = vrot.lane.b32.xlu0 %v516_v54, %s1814_s18  ;;  %v1000_v52 = vstv %s1680_s1  ;;  %v990_v54 = vstv %s1679_s25  ;;  %s2035_s1 = sld [smem:[#allocation9 + $0x1b]]  ;;  %s2041_s25 = sld [smem:[#allocation9 + $0x5f]] }
  0x6b   :  { %v1001_v55 = vmul.f32 %v1000_v52, %v1945_v16  ;;  %v991_v56 = vmul.f32 %v990_v54, %v1955_v28 }
  0x6e   :  { %457 = vrot.lane.b32.xlu1 %v455_v57, %s1813_s13  ;;  %630 = vrot.lane.b32.xlu0 %v628_v58, %s1815_s28  ;;  %v929_v57 = vstv %s1673_s26  ;;  %v1100_v58 = vstv %s1690_s27  ;;  %s2043_s26 = sld [smem:[#allocation9 + $0x5a]]  ;;  %s1819_s27 = smov 82  }
  0x6f   :  { %v930_v59 = vmul.f32 %v929_v57, %v1955_v28  ;;  %v1101_v60 = vmul.f32 %v1100_v58, %v1945_v16 }
  0x72   :  { %538 = vrot.lane.b32.xlu1 %v536_v61, %s1814_s18  ;;  %467 = vrot.lane.b32.xlu0 %v465_v62, %s1813_s13  ;;  %v1010_v61 = vstv %s1681_s29  ;;  %v939_v62 = vstv %s1674_s0  ;;  %s1820_s29 = smov 81   ;;  %s2051_s0 = sld [smem:[#allocation9 + $0x60]] }
  0x73   :  { %v1011_v63 = vmul.f32 %v1010_v61, %v1955_v28  ;;  %v940_v0 = vmul.f32 %v939_v62, %v1945_v16 }
  0x76   :  { %641 = vrot.lane.b32.xlu1 %v639_v1, %s1815_s28  ;;  %568 = vrot.lane.b32.xlu0 %v566_v3, %s1814_s18  ;;  %v1111_v1 = vstv %s1691_s30  ;;  %v1040_v3 = vstv %s1684_s4  ;;  %s2053_s30 = sld [smem:[#allocation9 + $0x2f]]  ;;  %s2057_s4 = sld [smem:[#allocation9 + $0x2]] }
  0x77   :  { %v1112_v4 = vmul.f32 %v1111_v1, %v1955_v28  ;;  %v1041_v5 = vmul.f32 %v1040_v3, %v1945_v16 }
  0x7a   :  { %477 = vrot.lane.b32.xlu1 %v475_v6, %s1813_s13  ;;  %651 = vrot.lane.b32.xlu0 %v649_v7, %s1815_s28  ;;  %v949_v6 = vstv %s1675_s5  ;;  %v1121_v7 = vstv %s1692_s6  ;;  %s2061_s5 = sld [smem:[#allocation9 + $0x33]]  ;;  %s2065_s6 = sld [smem:[#allocation9 + $0x5]] }
  0x7b   :  { %v950_v8 = vmul.f32 %v949_v6, %v1955_v28  ;;  %v1122_v9 = vmul.f32 %v1121_v7, %v1945_v16  ;;  %v782_v6 = vstv %s2035_s1  ;;  %s1823_s1 = smov 50  }
  0x7c   :  { %v303_v21 = vstv %s2057_s4  ;;  %s1640_s4 = sld [smem:[#allocation9 + $0x11]] }
  0x7e   :  { %588 = vrot.lane.b32.xlu1 %v586_v10, %s1814_s18  ;;  %578 = vrot.lane.b32.xlu0 %v576_v11, %s1814_s18  ;;  %v1060_v10 = vstv %s1686_s8  ;;  %v1050_v11 = vstv %s1685_s9  ;;  %s2067_s8 = sld [smem:[#allocation9 + $0x36]]  ;;  %s2071_s9 = sld [smem:[#allocation9 + $0x61]] }
  0x80   :  { %v307_v26 = vstv %s2061_s5  ;;  %s1641_s5 = sld [smem:[#allocation9 + $0x42]] }
  0x82   :  { %671 = vrot.lane.b32.xlu1 %v669_v14, %s1815_s28  ;;  %661 = vrot.lane.b32.xlu0 %v659_v15, %s1815_s28  ;;  %v1061_v14 = vmul.f32 %v1060_v10, %v1945_v16  ;;  %v1051_v15 = vmul.f32 %v1050_v11, %v1955_v28 }
  0x86   :  { %598 = vrot.lane.b32.xlu1 %v596_v19, %s1814_s18  ;;  %821 = vrot.lane.b32.xlu0 %v819_v20, %s1816_s14  ;;  %v1142_v19 = vmul.f32 %v1141_v17, %v1945_v16  ;;  %v1132_v20 = vmul.f32 %v1131_v18, %v1955_v28  ;;  %v1211_v17 = vstv %s2051_s0  ;;  %v1201_v18 = vstv %s2053_s30  ;;  %s1827_s0 = smov 45   ;;  %s1627_s30 = sld [smem:[#allocation9 + $0x3b]] }
  0x8a   :  { %681 = vrot.lane.b32.xlu1 %v679_v22, %s1815_s28  ;;  %608 = vrot.lane.b32.xlu0 %v606_v27, %s1814_s18 }
  0x8e   :  { %832 = vrot.lane.b32.xlu1 %v830_v31, %s1816_s14  ;;  %842 = vrot.lane.b32.xlu0 %v840_v32, %s1816_s14  ;;  %v1181_v31 = vstv %s1698_s16  ;;  %v1151_v32 = vstv %s1695_s17  ;;  %s2110_s16 = sld [smem:[#allocation9 + $0x6]]  ;;  %s2112_s17 = sld [smem:[#allocation9 + $0x37]] }
  0x92   :  { %618 = vrot.lane.b32.xlu1 %v616_v23, %s1814_s18  ;;  %852 = vrot.lane.b32.xlu0 %v850_v35, %s1816_s14 }
  0x96   :  { %862 = vrot.lane.b32.xlu1 %v860_v38, %s1816_s14  ;;  %962 = vrot.lane.b32.xlu0 %v960_v39, %s1817_s24  ;;  %v1182_v38 = vmul.f32 %v1181_v31, %v1945_v16  ;;  %v1152_v39 = vmul.f32 %v1151_v32, %v1955_v28  ;;  %v1231_v31 = vstv %s2071_s9  ;;  %v1221_v32 = vstv %s2073_s10  ;;  %s1668_s9 = sld [smem:[#allocation9 + $0x1f]]  ;;  %s1669_s10 = sld [smem:[#allocation9 + $0x50]] }
  0x9a   :  { %872 = vrot.lane.b32.xlu1 %v870_v42, %s1816_s14  ;;  %902 = vrot.lane.b32.xlu0 %v900_v43, %s1816_s14 }
  0x9e   :  { %973 = vrot.lane.b32.xlu1 %v971_v46, %s1817_s24  ;;  %983 = vrot.lane.b32.xlu0 %v981_v47, %s1817_s24  ;;  %v748_v46 = vstv %s2009_s19  ;;  %s286_s19 = sld [smem:[#allocation9]] }
  0xa2   :  { %922 = vrot.lane.b32.xlu1 %v920_v50, %s1816_s14  ;;  %912 = vrot.lane.b32.xlu0 %v910_v51, %s1816_s14  ;;  %v766_v50 = vstv %s2017_s21  ;;  %v732_v51 = vstv %s2019_s22  ;;  %s1608_s21 = sld [smem:[#allocation9 + $0x1]]  ;;  %s1609_s22 = sld [smem:[#allocation9 + $0x32]] }
  0xa6   :  { %1003 = vrot.lane.b32.xlu1 %v1001_v55, %s1817_s24  ;;  %993 = vrot.lane.b32.xlu0 %v991_v56, %s1817_s24 }
  0xaa   :  { %932 = vrot.lane.b32.xlu1 %v930_v59, %s1816_s14  ;;  %1103 = vrot.lane.b32.xlu0 %v1101_v60, %s1818_s7 }
  0xae   :  { %1013 = vrot.lane.b32.xlu1 %v1011_v63, %s1817_s24  ;;  %942 = vrot.lane.b32.xlu0 %v940_v0, %s1816_s14 }
  0xb2   :  { %1114 = vrot.lane.b32.xlu1 %v1112_v4, %s1818_s7  ;;  %1043 = vrot.lane.b32.xlu0 %v1041_v5, %s1817_s24  ;;  %v800_v4 = vstv %s2033_s23  ;;  %s1822_s23 = smov 51  }
  0xb6   :  { %952 = vrot.lane.b32.xlu1 %v950_v8, %s1816_s14  ;;  %1124 = vrot.lane.b32.xlu0 %v1122_v9, %s1818_s7  ;;  %v1191_v8 = vstv %s2041_s25  ;;  %v1090_v9 = vstv %s2043_s26  ;;  %s1824_s25 = smov 49   ;;  %s1825_s26 = smov 47  }
  0xb7   :  { %v750_v12 = vpop.permute.xlu1 %749  ;;  %v716_v13 = vpop.permute.xlu0 %715 }
  0xb8   :  { %v751_v23 = vrot.slane %v750_v12, 2  ;;  %v752_v35 = vrot.slane %v750_v12, 4  ;;  %v717_v36 = vrot.slane %v716_v13, 2  ;;  %v718_v37 = vrot.slane %v716_v13, 4 }
  0xba   :  { %1063 = vrot.lane.b32.xlu1 %v1061_v14, %s1817_s24  ;;  %1053 = vrot.lane.b32.xlu0 %v1051_v15, %s1817_s24  ;;  %v754_v47 = vsel %vm753_vm6, %v751_v23, %v752_v35  ;;  %v720_v49 = vsel %vm719_vm7, %v717_v36, %v718_v37  ;;  %v1192_v14 = vmul.f32 %v1191_v8, %v1955_v28 }
  0xbb   :  { %v756_v55 = vmul.f32 %v754_v47, %v748_v46  ;;  %v722_v56 = vmul.f32 %v720_v49, %v714_v48  ;;  %v1091_v15 = vmul.f32 %v1090_v9, %v1955_v28  ;;  %v308_v23 = vmul.f32 %v307_v26, %v1891_v25 }
  0xbc   :  { %v768_v22 = vpop.permute.xlu1 %767  ;;  %v734_v27 = vpop.permute.xlu0 %733  ;;  %v304_v35 = vmul.f32 %v303_v21, %v1889_v24 }
  0xbd   :  { %v769_v40 = vrot.slane %v768_v22, 2  ;;  %v770_v41 = vrot.slane %v768_v22, 4  ;;  %v735_v42 = vrot.slane %v734_v27, 2  ;;  %v736_v43 = vrot.slane %v734_v27, 4 }
  0xbe   :  { %1144 = vrot.lane.b32.xlu1 %v1142_v19, %s1818_s7  ;;  %1134 = vrot.lane.b32.xlu0 %v1132_v20, %s1818_s7  ;;  %v331_v22 = vstv %s2067_s8  ;;  %v1212_v27 = vmul.f32 %v1211_v17, %v1955_v28  ;;  %v309_v47 = vadd.f32 %v308_v23, %v304_v35  ;;  %s1655_s8 = sld [smem:[#allocation9 + $0x49]] }
  0xbf   :  { %v771_v57 = vsel %vm753_vm6, %v769_v40, %v770_v41  ;;  %v737_v58 = vsel %vm719_vm7, %v735_v42, %v736_v43  ;;  %v332_v36 = vmul.f32 %v331_v22, %v1891_v25 }
  0xc0   :  { %v802_v33 = vpop.permute.xlu1 %801  ;;  %v784_v34 = vpop.permute.xlu0 %783  ;;  %v773_v1 = vmul.f32 %v771_v57, %v766_v50  ;;  %v739_v3 = vmul.f32 %v737_v58, %v732_v51  ;;  %v319_v58 = vstv %s2100_s12  ;;  %s1683_s12 = sld [smem:[#allocation9 + $0x57]] }
  0xc1   :  { %v803_v59 = vrot.slane %v802_v33, 2  ;;  %v804_v60 = vrot.slane %v802_v33, 4  ;;  %v785_v61 = vrot.slane %v784_v34, 2  ;;  %v786_v62 = vrot.slane %v784_v34, 4 }
  0xc2   :  { %1083 = vrot.lane.b32.xlu1 %v1081_v29, %s1817_s24  ;;  %1073 = vrot.lane.b32.xlu0 %v1071_v30, %s1817_s24  ;;  %v1202_v29 = vmul.f32 %v1201_v18, %v1945_v16  ;;  %v327_v30 = vstv %s2065_s6  ;;  %v320_v9 = vmul.f32 %v319_v58, %v1889_v24  ;;  %s1654_s6 = sld [smem:[#allocation9 + $0x18]] }
  0xc3   :  { %v805_v5 = vsel %vm787_vm8, %v803_v59, %v804_v60  ;;  %v788_v7 = vsel %vm787_vm8, %v785_v61, %v786_v62  ;;  %v328_v37 = vmul.f32 %v327_v30, %v1889_v24  ;;  %v323_v59 = vstv %s2102_s15  ;;  %s1696_s15 = sld [smem:[#allocation9 + $0x2d]] }
  0xc4   :  { %v2025_v44 = vpop.permute.xlu1 %357  ;;  %v2027_v45 = vpop.permute.xlu0 %346  ;;  %v807_v12 = vmul.f32 %v805_v5, %v800_v4  ;;  %v790_v13 = vmul.f32 %v788_v7, %v782_v6  ;;  %v324_v7 = vmul.f32 %v323_v59, %v1891_v25  ;;  %vm1385_vm8 = vcmask 400384  }
  0xc5   :  { %v333_v48 = vadd.f32 %v332_v36, %v328_v37 }
  0xc6   :  { %1184 = vrot.lane.b32.xlu1 %v1182_v38, %s1818_s7  ;;  %1154 = vrot.lane.b32.xlu0 %v1152_v39, %s1818_s7  ;;  %v1232_v38 = vmul.f32 %v1231_v31, %v1955_v28  ;;  %v1222_v39 = vmul.f32 %v1221_v32, %v1945_v16 }
  0xc8   :  { %v2045_v52 = vpop.permute.xlu1 %377  ;;  %v2047_v54 = vpop.permute.xlu0 %367 }
  0xca   :  { %758 = vrot.lane.b32.xlu1 %v756_v55, %s1819_s27  ;;  %724 = vrot.lane.b32.xlu0 %v722_v56, %s1820_s29 }
  0xcc   :  { %v2055_v63 = vpop.permute.xlu1 %487  ;;  %v2059_v0 = vpop.permute.xlu0 %387 }
  0xcd   :  { %v389_v40 = vrot.slane %v2059_v0, 2 }
  0xce   :  { %775 = vrot.lane.b32.xlu1 %v773_v1, %s1819_s27  ;;  %741 = vrot.lane.b32.xlu0 %v739_v3, %s1820_s29  ;;  %v335_v1 = vstv %s2110_s16  ;;  %s1826_s27 = smov 46   ;;  %s1626_s29 = sld [smem:[#allocation9 + $0xa]] }
  0xcf   :  { %v390_v16 = vsel %vm349_vm9, %v2059_v0, %v389_v40  ;;  %v339_v0 = vstv %s2112_s17  ;;  %s1828_s16 = smov [#allocation10]  }
  0xd0   :  { %v2075_v10 = vpop.permute.xlu1 %427  ;;  %v398_v11 = vpop.permute.xlu0 %397  ;;  %v392_v57 = vadd.f32 %v390_v16, %v309_v47  ;;  %s1597_s17 = sshll.u32 %s1828_s16, 4  ;;  %s1598_s17 = int_to_ptr.vmem [resolvable:$true] %s1597_s17 }
  0xd1   :  { %v399_v46 = vrot.slane %v398_v11, 2  ;;  %p1781_p0 = scmp.lt.s32.totalorder %s1598_s17, %s1598_s17 }
  0xd2   :  { %809 = vrot.lane.b32.xlu1 %v807_v12, %s1821_s11  ;;  %792 = vrot.lane.b32.xlu0 %v790_v13, %s1821_s11  ;;  %v340_v12 = vmul.f32 %v339_v0, %v1891_v25  ;;  %v336_v13 = vmul.f32 %v335_v1, %v1889_v24  ;;  %s1682_s11 = sld [smem:[#allocation9 + $0x26]] }
  0xd3   :  { %v400_v55 = vsel %vm349_vm9, %v398_v11, %v399_v46 }
  0xd4   :  { %v2081_v19 = vpop.permute.xlu1 %508  ;;  %v2083_v20 = vpop.permute.xlu0 %498  ;;  %v402_v3 = vadd.f32 %v400_v55, %v392_v57 }
  0xd6   :  { %1194 = vrot.lane.b32.xlu1 %v1192_v14, %s1818_s7  ;;  %1093 = vrot.lane.b32.xlu0 %v1091_v15, %s1817_s24  ;;  %v429_v14 = vrot.slane %v2075_v10, 2 }
  0xd8   :  { %v448_v33 = vpop.permute.xlu1 %447  ;;  %v2095_v34 = vpop.permute.xlu0 %437  ;;  %v430_v30 = vsel %vm349_vm9, %v2075_v10, %v429_v14 }
  0xd9   :  { %v449_v41 = vrot.slane %v448_v33, 2  ;;  %v439_v22 = vrot.slane %v2095_v34, 2 }
  0xda   :  { %1214 = vrot.lane.b32.xlu1 %v1212_v27, %s1818_s7  ;;  %1204 = vrot.lane.b32.xlu0 %v1202_v29, %s1818_s7  ;;  %v325_v27 = vadd.f32 %v324_v7, %v320_v9  ;;  %v341_v29 = vadd.f32 %v340_v12, %v336_v13  ;;  %v287_v9 = vstv %s286_s19 }
  0xdb   :  { %v450_v28 = vsel %vm349_vm9, %v448_v33, %v449_v41  ;;  %v440_v35 = vsel %vm349_vm9, %v2095_v34, %v439_v22 }
  0xdc   :  { %v529_v42 = vpop.permute.xlu1 %528  ;;  %v2114_v43 = vpop.permute.xlu0 %518  ;;  %v452_v60 = vadd.f32 %v450_v28, %v333_v48  ;;  %v432_v37 = vadd.f32 %v430_v30, %v325_v27  ;;  %v348_v27 = vrot.slane %v2027_v45, 2 }
  0xdd   :  { %v530_v49 = vrot.slane %v529_v42, 2 }
  0xde   :  { %1234 = vrot.lane.b32.xlu1 %v1232_v38, %s1818_s7  ;;  %1224 = vrot.lane.b32.xlu0 %v1222_v39, %s1818_s7  ;;  %v442_v41 = vadd.f32 %v440_v35, %v432_v37  ;;  %v489_v35 = vrot.slane %v2055_v63, 2 }
  0xdf   :  { %v531_v61 = vsel %vm490_vm10, %v529_v42, %v530_v49 }
  0xe0   :  { %v458_v50 = vpop.permute.xlu1 %457  ;;  %v2121_v51 = vpop.permute.xlu0 %630  ;;  %v533_v11 = vadd.f32 %v531_v61, %v402_v3 }
  0xe1   :  { %v459_v56 = vrot.slane %v458_v50, 2 }
  0xe3   :  { %v460_v62 = vsel %vm349_vm9, %v458_v50, %v459_v56 }
  0xe4   :  { %v462_v4 = vadd.f32 %v460_v62, %v452_v60  ;;  %v539_v5 = vpop.permute.xlu1 %538  ;;  %v468_v6 = vpop.permute.xlu0 %467 }
  0xe5   :  { %v540_v8 = vrot.slane %v539_v5, 2  ;;  %v469_v17 = vrot.slane %v468_v6, 2 }
  0xe7   :  { %v541_v15 = vsel %vm490_vm10, %v539_v5, %v540_v8  ;;  %v470_v31 = vsel %vm349_vm9, %v468_v6, %v469_v17 }
  0xe8   :  { %v2136_v18 = vadd.f32 %v541_v15, %v533_v11  ;;  %v2138_v21 = vpop.permute.xlu1 %641  ;;  %v569_v26 = vpop.permute.xlu0 %568  ;;  %v472_v38 = vadd.f32 %v470_v31, %v341_v29  ;;  %v291_v11 = vstv %s1607_s20  ;;  %v288_v15 = vmul.f32 %v287_v9, %v1889_v24 }
  0xe9   :  { %v570_v32 = vrot.slane %v569_v26, 2  ;;  %v292_v14 = vmul.f32 %v291_v11, %v1891_v25 }
  0xeb   :  { %v571_v39 = vsel %vm490_vm10, %v569_v26, %v570_v32  ;;  %v293_v29 = vadd.f32 %v292_v14, %v288_v15  ;;  %v350_v32 = vsel %vm349_vm9, %v2027_v45, %v348_v27  ;;  %v632_v45 = vrot.slane %v2121_v51, 2 }
  0xec   :  { %v478_v33 = vpop.permute.xlu1 %477  ;;  %v2144_v23 = vpop.permute.xlu0 %651  ;;  %v573_v16 = vadd.f32 %v571_v39, %v442_v41  ;;  %v295_v39 = vstv %s1608_s21  ;;  %v500_v41 = vrot.slane %v2083_v20, 2  ;;  %v520_v15 = vrot.slane %v2114_v43, 2 }
  0xed   :  { %v479_v36 = vrot.slane %v478_v33, 2 }
  0xef   :  { %v480_v40 = vsel %vm349_vm9, %v478_v33, %v479_v36  ;;  %v359_v33 = vrot.slane %v2025_v44, 2  ;;  %v352_v36 = vadd.f32 %v350_v32, %v293_v29 }
  0xf0   :  { %v482_v42 = vadd.f32 %v480_v40, %v472_v38  ;;  %v589_v46 = vpop.permute.xlu1 %588  ;;  %v579_v10 = vpop.permute.xlu0 %578  ;;  %v299_v40 = vstv %s1609_s22 }
  0xf1   :  { %v590_v47 = vrot.slane %v589_v46, 2  ;;  %v580_v48 = vrot.slane %v579_v10, 2 }
  0xf3   :  { %v591_v28 = vsel %vm490_vm10, %v589_v46, %v590_v47  ;;  %v581_v49 = vsel %vm490_vm10, %v579_v10, %v580_v48  ;;  %v491_v46 = vsel %vm490_vm10, %v2055_v63, %v489_v35  ;;  %v300_v10 = vmul.f32 %v299_v40, %v1891_v25 }
  0xf4   :  { %v593_v50 = vadd.f32 %v591_v28, %v462_v4  ;;  %v2152_v34 = vadd.f32 %v581_v49, %v573_v16  ;;  %v2154_v55 = vpop.permute.xlu1 %671  ;;  %v2156_v56 = vpop.permute.xlu0 %661  ;;  %v296_v47 = vmul.f32 %v295_v39, %v1889_v24  ;;  %v369_v49 = vrot.slane %v2047_v54, 2 }
  0xf6   :  { %v301_v24 = vadd.f32 %v300_v10, %v296_v47 }
  0xf8   :  { %v599_v57 = vpop.permute.xlu1 %598  ;;  %v2158_v58 = vpop.permute.xlu0 %821 }
  0xf9   :  { %v600_v59 = vrot.slane %v599_v57, 2  ;;  %v823_v25 = vrot.slane %v2158_v58, 6 }
  0xfb   :  { %v601_v60 = vsel %vm490_vm10, %v599_v57, %v600_v59  ;;  %v634_v57 = vsel %vm633_vm11, %v2121_v51, %v632_v45  ;;  %v825_v9 = vsel %vm824_vm12, %v823_v25, %v2158_v58 }
  0xfc   :  { %v2161_v61 = vadd.f32 %v601_v60, %v593_v50  ;;  %v2163_v62 = vpop.permute.xlu1 %681  ;;  %v609_v1 = vpop.permute.xlu0 %608  ;;  %v643_v50 = vrot.slane %v2138_v21, 2 }
  0xfd   :  { %v610_v0 = vrot.slane %v609_v1, 2 }
  0xff   :  { %v611_v3 = vsel %vm490_vm10, %v609_v1, %v610_v0  ;;  %v370_v0 = vsel %vm349_vm9, %v2047_v54, %v369_v49 }
 0x100   :  { %v613_v4 = vadd.f32 %v611_v3, %v482_v42  ;;  %v2166_v5 = vpop.permute.xlu1 %832  ;;  %v2168_v6 = vpop.permute.xlu0 %842  ;;  %v360_v42 = vsel %vm349_vm9, %v2025_v44, %v359_v33  ;;  %v501_v44 = vsel %vm490_vm10, %v2083_v20, %v500_v41  ;;  %v644_v20 = vsel %vm633_vm11, %v2138_v21, %v643_v50 }
 0x101   :  { %v362_v48 = vadd.f32 %v360_v42, %v352_v36  ;;  %v834_v3 = vrot.slane %v2166_v5, 6  ;;  %v653_v33 = vrot.slane %v2144_v23, 2  ;;  %v844_v10 = vrot.slane %v2168_v6, 6 }
 0x103   :  { %v493_v63 = vadd.f32 %v491_v46, %v362_v48  ;;  %v835_v21 = vsel %vm824_vm12, %v834_v3, %v2166_v5  ;;  %v521_v5 = vsel %vm490_vm10, %v2114_v43, %v520_v15 }
 0x104   :  { %v619_v7 = vpop.permute.xlu1 %618  ;;  %v2170_v8 = vpop.permute.xlu0 %852 }
 0x105   :  { %v620_v12 = vrot.slane %v619_v7, 2  ;;  %v503_v59 = vadd.f32 %v501_v44, %v493_v63  ;;  %v854_v63 = vrot.slane %v2170_v8, 6 }
 0x107   :  { %v621_v13 = vsel %vm490_vm10, %v619_v7, %v620_v12  ;;  %v636_v51 = vadd.f32 %v634_v57, %v503_v59  ;;  %v510_v7 = vrot.slane %v2081_v19, 2  ;;  %v372_v12 = vadd.f32 %v370_v0, %v301_v24 }
 0x108   :  { %v2175_v17 = vadd.f32 %v621_v13, %v613_v4  ;;  %v2177_v26 = vpop.permute.xlu1 %862  ;;  %v963_v22 = vpop.permute.xlu0 %962  ;;  %v379_v4 = vrot.slane %v2045_v52, 2  ;;  %v673_v24 = vrot.slane %v2154_v55, 2 }
 0x109   :  { %v964_v11 = vrot.slane %v963_v22, 6  ;;  %v646_v13 = vadd.f32 %v644_v20, %v636_v51  ;;  %v511_v58 = vsel %vm490_vm10, %v2081_v19, %v510_v7  ;;  %v683_v51 = vrot.slane %v2163_v62, 2 }
 0x10a   :  { %v380_v29 = vsel %vm349_vm9, %v2045_v52, %v379_v4  ;;  %v663_v52 = vrot.slane %v2156_v56, 2  ;;  %v855_v7 = vsel %vm824_vm12, %v854_v63, %v2170_v8 }
 0x10b   :  { %v827_v32 = vadd.f32 %v825_v9, %v646_v13  ;;  %v966_v35 = vsel %vm965_vm13, %v964_v11, %v963_v22  ;;  %v382_v39 = vadd.f32 %v380_v29, %v372_v12  ;;  %v654_v22 = vsel %vm633_vm11, %v2144_v23, %v653_v33 }
 0x10c   :  { %v2180_v30 = vpop.permute.xlu1 %872  ;;  %v2182_v31 = vpop.permute.xlu0 %902  ;;  %v664_v43 = vsel %vm633_vm11, %v2156_v56, %v663_v52  ;;  %v845_v23 = vsel %vm824_vm12, %v844_v10, %v2168_v6  ;;  %v674_v12 = vsel %vm633_vm11, %v2154_v55, %v673_v24  ;;  %v864_v13 = vrot.slane %v2177_v26, 6 }
 0x10d   :  { %v837_v40 = vadd.f32 %v835_v21, %v827_v32  ;;  %v513_v19 = vadd.f32 %v511_v58, %v382_v39  ;;  %v684_v8 = vsel %vm633_vm11, %v2163_v62, %v683_v51  ;;  %v874_v32 = vrot.slane %v2180_v30, 6 }
 0x10e   :  { %v676_v58 = vadd.f32 %v674_v12, %v2136_v18  ;;  %v865_v33 = vsel %vm824_vm12, %v864_v13, %v2177_v26  ;;  %v904_v51 = vrot.slane %v2182_v31, 6 }
 0x10f   :  { %v968_v45 = vadd.f32 %v966_v35, %v837_v40  ;;  %v523_v48 = vadd.f32 %v521_v5, %v513_v19  ;;  %v875_v62 = vsel %vm824_vm12, %v874_v32, %v2180_v30 }
 0x110   :  { %v974_v37 = vpop.permute.xlu1 %973  ;;  %v2188_v38 = vpop.permute.xlu0 %983  ;;  %v686_v39 = vadd.f32 %v684_v8, %v676_v58 }
 0x111   :  { %v975_v27 = vrot.slane %v974_v37, 6  ;;  %v656_v57 = vadd.f32 %v654_v22, %v523_v48  ;;  %v985_v59 = vrot.slane %v2188_v38, 6 }
 0x112   :  { %v867_v19 = vadd.f32 %v865_v33, %v686_v39 }
 0x113   :  { %v976_v46 = vsel %vm965_vm13, %v975_v27, %v974_v37  ;;  %v666_v20 = vadd.f32 %v664_v43, %v656_v57 }
 0x114   :  { %v2198_v16 = vpop.permute.xlu1 %922  ;;  %v2200_v28 = vpop.permute.xlu0 %912  ;;  %v978_v49 = vadd.f32 %v976_v46, %v968_v45  ;;  %v877_v10 = vadd.f32 %v875_v62, %v867_v19 }
 0x115   :  { %v847_v11 = vadd.f32 %v845_v23, %v666_v20  ;;  %v924_v13 = vrot.slane %v2198_v16, 6 }
 0x117   :  { %v857_v21 = vadd.f32 %v855_v7, %v847_v11 }
 0x118   :  { %v2209_v60 = vpop.permute.xlu1 %1003  ;;  %v2211_v1 = vpop.permute.xlu0 %993 }
 0x119   :  { %v995_v9 = vrot.slane %v2211_v1, 6  ;;  %v1005_v35 = vrot.slane %v2209_v60, 6 }
 0x11b   :  { %v996_v55 = vsel %vm965_vm13, %v995_v9, %v2211_v1  ;;  %v1006_v45 = vsel %vm965_vm13, %v1005_v35, %v2209_v60 }
 0x11c   :  { %v2222_v14 = vpop.permute.xlu1 %932  ;;  %v1104_v54 = vpop.permute.xlu0 %1103 }
 0x11d   :  { %v1105_v36 = vrot.slane %v1104_v54, 6  ;;  %v934_v8 = vrot.slane %v2222_v14, 6 }
 0x11f   :  { %v1107_v47 = vsel %vm1106_vm14, %v1105_v36, %v1104_v54  ;;  %v986_v54 = vsel %vm965_vm13, %v985_v59, %v2188_v38 }
 0x120   :  { %v2233_v41 = vpop.permute.xlu1 %1013  ;;  %v2235_v42 = vpop.permute.xlu0 %942  ;;  %v1109_v25 = vadd.f32 %v1107_v47, %v978_v49  ;;  %v988_v38 = vadd.f32 %v986_v54, %v857_v21  ;;  %v914_v54 = vrot.slane %v2200_v28, 6 }
 0x121   :  { %v1015_v46 = vrot.slane %v2233_v41, 6 }
 0x122   :  { %v998_v40 = vadd.f32 %v996_v55, %v988_v38 }
 0x123   :  { %v1016_v30 = vsel %vm965_vm13, %v1015_v46, %v2233_v41 }
 0x124   :  { %v1115_v44 = vpop.permute.xlu1 %1114  ;;  %v2245_v50 = vpop.permute.xlu0 %1043 }
 0x125   :  { %v1116_v37 = vrot.slane %v1115_v44, 6 }
 0x127   :  { %v1117_v0 = vsel %vm1106_vm14, %v1116_v37, %v1115_v44  ;;  %v1008_v44 = vadd.f32 %v1006_v45, %v877_v10  ;;  %v944_v10 = vrot.slane %v2235_v42, 6 }
 0x128   :  { %v2255_v3 = vadd.f32 %v1117_v0, %v1109_v25  ;;  %v2257_v4 = vpop.permute.xlu1 %952  ;;  %v1125_v56 = vpop.permute.xlu0 %1124 }
 0x129   :  { %v1126_v15 = vrot.slane %v1125_v56, 6  ;;  %v1018_v37 = vadd.f32 %v1016_v30, %v1008_v44 }
 0x12a   :  { %v1258_v6 = vrot.slane %v2255_v3, %v1873_v53  ;;  %v1251_v11 = vcombine.high %v2255_v3, %v2255_v3  ;;  %v905_v3 = vsel %vm824_vm12, %v904_v51, %v2182_v31  ;;  %v935_v31 = vsel %vm824_vm12, %v934_v8, %v2222_v14 }
 0x12b   :  { %v1127_v36 = vsel %vm1106_vm14, %v1126_v15, %v1125_v56 }
 0x12c   :  { %v2270_v27 = vpop.permute.xlu1 %1063  ;;  %v2272_v29 = vpop.permute.xlu0 %1053  ;;  %1267 = vrot.lane.b32.xlu0 %v1258_v6, %s1822_s23  ;;  %v1129_v18 = vadd.f32 %v1127_v36, %v998_v40  ;;  %v1266_v59 = vcombine.high %v1258_v6, %v1258_v6  ;;  %v1265_v39 = vrot.slane %v1251_v11, %v1873_v53  ;;  %v925_v40 = vsel %vm824_vm12, %v924_v13, %v2198_v16 }
 0x12d   :  { %v1045_v16 = vrot.slane %v2245_v50, 6  ;;  %v1055_v30 = vrot.slane %v2272_v29, 6 }
 0x130   :  { %v1145_v5 = vpop.permute.xlu1 %1144  ;;  %v1135_v52 = vpop.permute.xlu0 %1134 }
 0x131   :  { %v1136_v1 = vrot.slane %v1135_v52, 6  ;;  %v1146_v26 = vrot.slane %v1145_v5, 6 }
 0x133   :  { %v1137_v22 = vsel %vm1106_vm14, %v1136_v1, %v1135_v52  ;;  %v1147_v63 = vsel %vm1106_vm14, %v1146_v26, %v1145_v5  ;;  %v915_v5 = vsel %vm824_vm12, %v914_v54, %v2200_v28  ;;  %v1065_v28 = vrot.slane %v2270_v27, 6 }
 0x134   :  { %v1139_v47 = vadd.f32 %v1137_v22, %v1129_v18  ;;  %v2291_v48 = vpop.permute.xlu1 %1083  ;;  %v2293_v49 = vpop.permute.xlu0 %1073  ;;  %v1149_v24 = vadd.f32 %v1147_v63, %v1018_v37 }
 0x135   :  { %v1075_v63 = vrot.slane %v2293_v49, 6 }
 0x136   :  { %v2298_v43 = vrot.slane %v1139_v47, %v1873_v53  ;;  %v1307_v23 = vcombine.high %v1139_v47, %v1139_v47  ;;  %v954_v47 = vrot.slane %v2257_v4, 6 }
 0x138   :  { %v2301_v60 = vpop.permute.xlu1 %1184  ;;  %v1155_v57 = vpop.permute.xlu0 %1154  ;;  %1323 = vrot.lane.b32.xlu1 %v2298_v43, %s1823_s1  ;;  %v1321_v12 = vrot.slane %v1307_v23, %v1873_v53  ;;  %v1322_v22 = vcombine.high %v2298_v43, %v2298_v43  ;;  %v1046_v43 = vsel %vm965_vm13, %v1045_v16, %v2245_v50  ;;  %v1085_v50 = vrot.slane %v2291_v48, 6 }
 0x139   :  { %v1156_v25 = vrot.slane %v1155_v57, 6 }
 0x13b   :  { %v1157_v41 = vsel %vm1106_vm14, %v1156_v25, %v1155_v57 }
 0x13c   :  { %v2306_v0 = vadd.f32 %v1157_v41, %v1149_v24  ;;  %v759_v20 = vpop.permute.xlu1 %758  ;;  %v725_v56 = vpop.permute.xlu0 %724  ;;  %1269 = vrot.lane.b32.xlu1 %v1266_v59, %s1822_s23  ;;  %v1066_v59 = vsel %vm965_vm13, %v1065_v28, %v2270_v27  ;;  %v1186_v41 = vrot.slane %v2301_v60, 6  ;;  %v955_v27 = vsel %vm824_vm12, %v954_v47, %v2257_v4 }
 0x13d   :  { %v760_v7 = vrot.slane %v759_v20, 6  ;;  %v726_v9 = vrot.slane %v725_v56, 6  ;;  %v1086_v4 = vsel %vm965_vm13, %v1085_v50, %v2291_v48  ;;  %v879_v50 = vstv %s1668_s9 }
 0x13e   :  { %v1370_v6 = vrot.slane %v2306_v0, %v1873_v53  ;;  %v1363_v45 = vcombine.high %v2306_v0, %v2306_v0 }
 0x13f   :  { %v762_v15 = vsel %vm761_vm15, %v760_v7, %v759_v20  ;;  %v728_v21 = vsel %vm727_vm0, %v726_v9, %v725_v56  ;;  %v1056_v9 = vsel %vm965_vm13, %v1055_v30, %v2272_v29 }
 0x140   :  { %v776_v32 = vpop.permute.xlu1 %775  ;;  %v742_v55 = vpop.permute.xlu0 %741  ;;  %1379 = vrot.lane.b32.xlu0 %v1370_v6, %s1824_s25  ;;  %1327 = vrot.lane.b32.xlu1 %v1321_v12, %s1823_s1  ;;  %v764_v33 = vadd.f32 %v762_v15, %v2161_v61  ;;  %v730_v35 = vadd.f32 %v728_v21, %v2152_v34  ;;  %v1378_v36 = vcombine.high %v1370_v6, %v1370_v6 }
 0x141   :  { %v777_v58 = vrot.slane %v776_v32, 6  ;;  %v743_v38 = vrot.slane %v742_v55, 6  ;;  %v1377_v7 = vrot.slane %v1363_v45, %v1873_v53  ;;  %v1076_v6 = vsel %vm965_vm13, %v1075_v63, %v2293_v49 }
 0x143   :  { %v778_v52 = vsel %vm761_vm15, %v777_v58, %v776_v32  ;;  %v744_v62 = vsel %vm727_vm0, %v743_v38, %v742_v55 }
 0x144   :  { %v780_v46 = vadd.f32 %v778_v52, %v764_v33  ;;  %v746_v61 = vadd.f32 %v744_v62, %v730_v35  ;;  %v810_v34 = vpop.permute.xlu1 %809  ;;  %v793_v1 = vpop.permute.xlu0 %792  ;;  %1381 = vrot.lane.b32.xlu1 %v1378_v36, %s1824_s25  ;;  %1271 = vrot.lane.b32.xlu0 %v1265_v39, %s1822_s23 }
 0x145   :  { %v811_v19 = vrot.slane %v810_v34, 6  ;;  %v794_v18 = vrot.slane %v793_v1, 6 }
 0x146   :  { %v927_v26 = vadd.f32 %v925_v40, %v780_v46  ;;  %v907_v14 = vadd.f32 %v905_v3, %v746_v61 }
 0x147   :  { %v796_v44 = vsel %vm795_vm1, %v794_v18, %v793_v1  ;;  %v812_v0 = vsel %vm795_vm1, %v811_v19, %v810_v34  ;;  %vm1441_vm1 = vcmask 384000  }
 0x148   :  { %v937_v37 = vadd.f32 %v935_v31, %v927_v26  ;;  %v917_v57 = vadd.f32 %v915_v5, %v907_v14  ;;  %v798_v25 = vadd.f32 %v796_v44, %v2175_v17  ;;  %v1195_v24 = vpop.permute.xlu1 %1194  ;;  %v1094_v23 = vpop.permute.xlu0 %1093  ;;  %1325 = vrot.lane.b32.xlu0 %v1322_v22, %s1823_s1  ;;  %v945_v17 = vsel %vm824_vm12, %v944_v10, %v2235_v42  ;;  %v2382_v44 = vld [vmem:[#allocation2] sm:$0x3f] }
 0x149   :  { %v1196_v11 = vrot.slane %v1195_v24, 6  ;;  %v1187_v42 = vsel %vm1106_vm14, %v1186_v41, %v2301_v60  ;;  %v1095_v21 = vrot.slane %v1094_v23, 6  ;;  %v404_v22 = vstv %s1626_s29 }
 0x14a   :  { %v814_v20 = vadd.f32 %v812_v0, %v798_v25  ;;  %v1048_v56 = vadd.f32 %v1046_v43, %v917_v57  ;;  %v1068_v51 = vadd.f32 %v1066_v59, %v937_v37  ;;  %v405_v63 = vmul.f32 %v2382_v44, %v404_v22  ;;  %v1738_v59 = vld [vmem:[#allocation2] sm:$0xff] }
 0x14b   :  { %v1197_v49 = vsel %vm1106_vm14, %v1196_v11, %v1195_v24  ;;  %v1096_v60 = vsel %vm965_vm13, %v1095_v21, %v1094_v23  ;;  %v414_v37 = vstv %s1627_s30  ;;  %v545_v57 = vstv %s1640_s4  ;;  %v2387_v24 = vld [vmem:[#allocation3] sm:$0x3f] }
 0x14c   :  { %v947_v12 = vadd.f32 %v945_v17, %v814_v20  ;;  %v1058_v13 = vadd.f32 %v1056_v9, %v1048_v56  ;;  %v1215_v54 = vpop.permute.xlu1 %1214  ;;  %v1205_v15 = vpop.permute.xlu0 %1204  ;;  %1383 = vrot.lane.b32.xlu0 %v1377_v7, %s1824_s25  ;;  %v1078_v3 = vadd.f32 %v1076_v6, %v1068_v51  ;;  %v415_v23 = vmul.f32 %v2387_v24, %v414_v37  ;;  %v1739_v7 = vld [vmem:[#allocation3] sm:$0xff] }
 0x14d   :  { %v1216_v29 = vrot.slane %v1215_v54, 6  ;;  %v1206_v8 = vrot.slane %v1205_v15, 6  ;;  %v546_v43 = vmul.f32 %v2382_v44, %v545_v57  ;;  %v690_v41 = vrot.slane %v1738_v59, 2 }
 0x14e   :  { %v1189_v32 = vadd.f32 %v1187_v42, %v1058_v13  ;;  %v957_v55 = vadd.f32 %v955_v27, %v947_v12  ;;  %v555_v0 = vstv %s1641_s5  ;;  %v688_v20 = vstv %s1654_s6  ;;  %v1740_v27 = vld [vmem:[#allocation2 + $0x2] sm:$0x3f] }
 0x14f   :  { %v1207_v58 = vsel %vm1106_vm14, %v1206_v8, %v1205_v15  ;;  %v1217_v40 = vsel %vm1106_vm14, %v1216_v29, %v1215_v54  ;;  %v556_v56 = vmul.f32 %v2387_v24, %v555_v0  ;;  %v692_v51 = vmul.f32 %v690_v41, %v688_v20  ;;  %v1741_v54 = vld [vmem:[#allocation3 + $0x2] sm:$0x3f] }
 0x150   :  { %v1199_v38 = vadd.f32 %v1197_v49, %v1189_v32  ;;  %v1088_v33 = vadd.f32 %v1086_v4, %v957_v55  ;;  %v1209_v35 = vadd.f32 %v1207_v58, %v1078_v3  ;;  %v1235_v36 = vpop.permute.xlu1 %1234  ;;  %v1225_v39 = vpop.permute.xlu0 %1224  ;;  %v703_v17 = vrot.slane %v1739_v7, 2 }
 0x151   :  { %v1236_v5 = vrot.slane %v1235_v36, 6  ;;  %v1226_v52 = vrot.slane %v1225_v39, 6  ;;  %v701_v9 = vstv %s1655_s8  ;;  %v880_v6 = vmul.f32 %v1740_v27, %v879_v50 }
 0x152   :  { %v1098_v62 = vadd.f32 %v1096_v60, %v1088_v33  ;;  %v1219_v31 = vadd.f32 %v1217_v40, %v1209_v35  ;;  %v1426_v46 = vrot.slane %v1199_v38, %v1873_v53  ;;  %v1419_v28 = vcombine.high %v1199_v38, %v1199_v38 }
 0x153   :  { %v1227_v48 = vsel %vm1106_vm14, %v1226_v52, %v1225_v39  ;;  %v1237_v1 = vsel %vm1106_vm14, %v1236_v5, %v1235_v36  ;;  %v705_v11 = vmul.f32 %v703_v17, %v701_v9  ;;  %v889_v12 = vstv %s1669_s10 }
 0x154   :  { %v1229_v61 = vadd.f32 %v1227_v48, %v1098_v62  ;;  %1435 = vrot.lane.b32.xlu1 %v1426_v46, %s1825_s26  ;;  %v1482_v34 = vrot.slane %v1219_v31, %v1873_v53  ;;  %v1434_v18 = vcombine.high %v1426_v46, %v1426_v46  ;;  %v1475_v45 = vcombine.high %v1219_v31, %v1219_v31 }
 0x155   :  { %v1433_v26 = vrot.slane %v1419_v28, %v1873_v53  ;;  %v1020_v13 = vstv %s1682_s11  ;;  %v890_v15 = vmul.f32 %v1741_v54, %v889_v12  ;;  %v1030_v21 = vstv %s1683_s12 }
 0x156   :  { %v1239_v16 = vadd.f32 %v1237_v1, %v1229_v61  ;;  %1491 = vrot.lane.b32.xlu0 %v1482_v34, %s1826_s27  ;;  %v1489_v14 = vrot.slane %v1475_v45, %v1873_v53  ;;  %v1490_v10 = vcombine.high %v1482_v34, %v1482_v34  ;;  %v1021_v42 = vmul.f32 %v1740_v27, %v1020_v13 }
 0x157   :  { %v1161_v29 = vstv %s1696_s15  ;;  %v1031_v8 = vmul.f32 %v1741_v54, %v1030_v21  ;;  %v258_v49 = vand.u32 127, %v125_v2 }
 0x158   :  { %v1538_v19 = vrot.slane %v1239_v16, %v1873_v53  ;;  %v1531_v30 = vcombine.high %v1239_v16, %v1239_v16  ;;  %v1162_v32 = vmul.f32 %v1740_v27, %v1161_v29 }
 0x159   :  { %v259_v58 = vadd.s32 128, %v258_v49  ;;  %v2404_v35 = vand.u32 15, %v258_v49 }
 0x15a   :  { %1547 = vrot.lane.b32.xlu1 %v1538_v19, %s1827_s0  ;;  %1437 = vrot.lane.b32.xlu0 %v1434_v18, %s1825_s26  ;;  %v1546_v47 = vcombine.high %v1538_v19, %v1538_v19  ;;  %v1545_v25 = vrot.slane %v1531_v30, %v1873_v53 }
 0x15b   :  { %v2406_v36 = vand.u32 15, %v259_v58  ;;  %vm1240_vm3 = vcmp.ge.s32.totalorder %v2404_v35, 3  ;;  %vm1296_vm6 = vcmp.ge.s32.totalorder %v2404_v35, 2  ;;  %vm1352_vm15 = vcmp.ge.s32.totalorder %v2404_v35, 1 }
 0x15d   :  { %vm1241_vm4 = vcmp.ge.s32.totalorder %v2406_v36, 3  ;;  %vm1297_vm7 = vcmp.ge.s32.totalorder %v2406_v36, 2  ;;  %vm1353_vm0 = vcmp.ge.s32.totalorder %v2406_v36, 1 }
 0x15e   :  { %1439 = vrot.lane.b32.xlu1 %v1433_v26, %s1825_s26  ;;  %1495 = vrot.lane.b32.xlu0 %v1489_v14, %s1826_s27 }
 0x162   :  { %1493 = vrot.lane.b32.xlu1 %v1490_v10, %s1826_s27  ;;  %1549 = vrot.lane.b32.xlu0 %v1546_v47, %s1827_s0 }
 0x166   :  { %1551 = vrot.lane.b32.xlu1 %v1545_v25, %s1827_s0  ;;  %407 = vrot.lane.b32.xlu0 %v405_v63, %s1813_s13 }
 0x16a   :  { %417 = vrot.lane.b32.xlu1 %v415_v23, %s1813_s13  ;;  %548 = vrot.lane.b32.xlu0 %v546_v43, %s1814_s18  ;;  %s1697_s13 = sld [smem:[#allocation9 + $0x5e]] }
 0x16e   :  { %558 = vrot.lane.b32.xlu1 %v556_v56, %s1814_s18  ;;  %694 = vrot.lane.b32.xlu0 %v692_v51, %s1815_s28  ;;  %s1612_s18 = sld [smem:[#allocation9 + $0x3]] }
 0x170   :  { %v1171_v55 = vstv %s1697_s13 }
 0x171   :  { %v1172_v3 = vmul.f32 %v1741_v54, %v1171_v55 }
 0x172   :  { %707 = vrot.lane.b32.xlu1 %v705_v11, %s1815_s28  ;;  %882 = vrot.lane.b32.xlu0 %v880_v6, %s1816_s14 }
 0x176   :  { %892 = vrot.lane.b32.xlu1 %v890_v15, %s1816_s14  ;;  %1023 = vrot.lane.b32.xlu0 %v1021_v42, %s1817_s24  ;;  %s1613_s14 = sld [smem:[#allocation9 + $0x34]] }
 0x17a   :  { %1033 = vrot.lane.b32.xlu1 %v1031_v8, %s1817_s24  ;;  %1164 = vrot.lane.b32.xlu0 %v1162_v32, %s1818_s7  ;;  %v311_v32 = vstv %s1612_s18 }
 0x17c   :  { %v315_v55 = vstv %s1613_s14 }
 0x17d   :  { %v316_v49 = vmul.f32 %v2387_v24, %v315_v55 }
 0x17e   :  { %1174 = vrot.lane.b32.xlu1 %v1172_v3, %s1818_s7 }
 0x19e   :  { %v1268_v38 = vpop.permute.xlu0 %1267 }
 0x1aa   :  { %v1324_v4 = vpop.permute.xlu1 %1323 }
 0x1ae   :  { %v1270_v33 = vpop.permute.xlu1 %1269 }
 0x1af   :  { %v1274_v40 = vsel %vm1273_vm2, %v1268_v38, %v1270_v33 }
 0x1b0   :  { %v1278_v62 = vsel %vm1240_vm3, %v1274_v40, 0.0  ;;  %vm1411_vm3 = vcmp.lt.s32.totalorder %v2406_v36, 15 }
 0x1b2   :  { %v1380_v39 = vpop.permute.xlu0 %1379  ;;  %v1328_v60 = vpop.permute.xlu1 %1327 }
 0x1b6   :  { %v1272_v5 = vpop.permute.xlu0 %1271  ;;  %v1382_v46 = vpop.permute.xlu1 %1381 }
 0x1b7   :  { %v1275_v52 = vsel %vm1273_vm2, %v1270_v33, %v1272_v5  ;;  %v1386_v19 = vsel %vm1385_vm8, %v1380_v39, %v1382_v46  ;;  %vm1410_vm2 = vcmp.lt.s32.totalorder %v2404_v35, 15 }
 0x1b8   :  { %v1279_v31 = vsel %vm1241_vm4, %v1275_v52, 0.0  ;;  %v1390_v22 = vsel %vm1352_vm15, %v1386_v19, 0.0  ;;  %vm1497_vm4 = vcmask 375808   ;;  %vm1523_vm15 = vcmp.lt.s32.totalorder %v2406_v36, 13 }
 0x1b9   :  { %v1282_v2 = vcombine.low %v1278_v62, %v1279_v31 }
 0x1ba   :  { %v1326_v48 = vpop.permute.xlu0 %1325 }
 0x1bb   :  { %v1289_v61 = vrot.slane %v1282_v2, %v1873_v53  ;;  %v1330_v34 = vsel %vm1329_vm5, %v1324_v4, %v1326_v48  ;;  %v1331_v1 = vsel %vm1329_vm5, %v1326_v48, %v1328_v60  ;;  %vm1466_vm5 = vcmp.lt.s32.totalorder %v2404_v35, 14 }
 0x1bc   :  { %v1334_v16 = vsel %vm1296_vm6, %v1330_v34, 0.0  ;;  %v1335_v28 = vsel %vm1297_vm7, %v1331_v1, 0.0  ;;  %vm1467_vm6 = vcmp.lt.s32.totalorder %v2406_v36, 14  ;;  %vm1553_vm7 = vcmask 367616  }
 0x1bd   :  { %v1338_v18 = vcombine.low %v1334_v16, %v1335_v28  ;;  %1290 = vrot.lane.b32.xlu0 %v1289_v61, %s1815_s28  ;;  %v312_v4 = vmul.f32 %v2382_v44, %v311_v32 }
 0x1be   :  { %v1384_v45 = vpop.permute.xlu0 %1383 }
 0x1bf   :  { %v1345_v26 = vrot.slane %v1338_v18, %v1873_v53  ;;  %v1387_v14 = vsel %vm1385_vm8, %v1382_v46, %v1384_v45  ;;  %vm1522_vm8 = vcmp.lt.s32.totalorder %v2404_v35, 13  ;;  %v317_v33 = vadd.f32 %v316_v49, %v312_v4 }
 0x1c0   :  { %v1391_v10 = vsel %vm1353_vm0, %v1387_v14, 0.0 }
 0x1c1   :  { %v1394_v47 = vcombine.low %v1390_v22, %v1391_v10  ;;  %1346 = vrot.lane.b32.xlu1 %v1345_v26, %s1815_s28 }
 0x1c3   :  { %v1401_v30 = vrot.slane %v1394_v47, %v1873_v53 }
 0x1c5   :  { %1402 = vrot.lane.b32.xlu0 %v1401_v30, %s1815_s28 }
 0x1c6   :  { %v1436_v63 = vpop.permute.xlu1 %1435 }
 0x1c8   :  { %v1492_v37 = vpop.permute.xlu0 %1491 }
 0x1cc   :  { %v1548_v57 = vpop.permute.xlu1 %1547  ;;  %v1438_v25 = vpop.permute.xlu0 %1437 }
 0x1cd   :  { %v1442_v23 = vsel %vm1441_vm1, %v1436_v63, %v1438_v25 }
 0x1ce   :  { %v1446_v0 = vsel %vm1410_vm2, %v1442_v23, 0.0 }
 0x1d0   :  { %v1440_v43 = vpop.permute.xlu1 %1439  ;;  %v1496_v59 = vpop.permute.xlu0 %1495 }
 0x1d1   :  { %v1443_v41 = vsel %vm1441_vm1, %v1438_v25, %v1440_v43 }
 0x1d2   :  { %v1447_v20 = vsel %vm1411_vm3, %v1443_v41, 0.0 }
 0x1d3   :  { %v1450_v56 = vcombine.low %v1446_v0, %v1447_v20 }
 0x1d4   :  { %v1494_v51 = vpop.permute.xlu1 %1493  ;;  %v1550_v7 = vpop.permute.xlu0 %1549 }
 0x1d5   :  { %v1457_v17 = vrot.slane %v1450_v56, %v1873_v53  ;;  %v1498_v9 = vsel %vm1497_vm4, %v1492_v37, %v1494_v51  ;;  %v1499_v50 = vsel %vm1497_vm4, %v1494_v51, %v1496_v59  ;;  %v1554_v12 = vsel %vm1553_vm7, %v1548_v57, %v1550_v7 }
 0x1d6   :  { %v1502_v11 = vsel %vm1466_vm5, %v1498_v9, 0.0  ;;  %v1503_v27 = vsel %vm1467_vm6, %v1499_v50, 0.0  ;;  %v1558_v42 = vsel %vm1522_vm8, %v1554_v12, 0.0 }
 0x1d7   :  { %v1506_v6 = vcombine.low %v1502_v11, %v1503_v27  ;;  %1458 = vrot.lane.b32.xlu1 %v1457_v17, %s1815_s28 }
 0x1d8   :  { %v1552_v13 = vpop.permute.xlu1 %1551  ;;  %v408_v3 = vpop.permute.xlu0 %407 }
 0x1d9   :  { %v1513_v54 = vrot.slane %v1506_v6, %v1873_v53  ;;  %v1555_v15 = vsel %vm1553_vm7, %v1550_v7, %v1552_v13  ;;  %v409_v58 = vrot.slane %v408_v3, 2 }
 0x1da   :  { %v1559_v21 = vsel %vm1523_vm15, %v1555_v15, 0.0 }
 0x1db   :  { %v1562_v29 = vcombine.low %v1558_v42, %v1559_v21  ;;  %1514 = vrot.lane.b32.xlu0 %v1513_v54, %s1815_s28  ;;  %v410_v35 = vsel %vm349_vm9, %v408_v3, %v409_v58 }
 0x1dc   :  { %v418_v38 = vpop.permute.xlu1 %417  ;;  %v549_v39 = vpop.permute.xlu0 %548  ;;  %v412_v60 = vadd.f32 %v410_v35, %v317_v33 }
 0x1dd   :  { %v1569_v8 = vrot.slane %v1562_v29, %v1873_v53  ;;  %v419_v36 = vrot.slane %v418_v38, 2  ;;  %v550_v40 = vrot.slane %v549_v39, 2 }
 0x1df   :  { %1570 = vrot.lane.b32.xlu1 %v1569_v8, %s1815_s28  ;;  %v420_v53 = vsel %vm349_vm9, %v418_v38, %v419_v36  ;;  %v551_v62 = vsel %vm490_vm10, %v549_v39, %v550_v40 }
 0x1e0   :  { %v559_v5 = vpop.permute.xlu1 %558  ;;  %v422_v52 = vadd.f32 %v420_v53, %v412_v60  ;;  %v695_v2 = vpop.permute.xlu0 %694  ;;  %v1576_v60 = vstv %s2471_s2  ;;  %s1776_s2 = scalar_lea.vmem %s1598_s17, 64 }
 0x1e1   :  { %v560_v31 = vrot.slane %v559_v5, 2  ;;  %v696_v46 = vrot.slane %v695_v2, 6  ;;  %p1777_p13 = scmp.ne.s32.totalorder %s1598_s17, %s1776_s2  ;;  %p1782_p1 = scmp.lt.s32.totalorder %s1776_s2, %s1776_s2 }
 0x1e2   :  { %v553_v44 = vadd.f32 %v551_v62, %v422_v52 }
 0x1e3   :  { %v561_v24 = vsel %vm490_vm10, %v559_v5, %v560_v31  ;;  %v697_v34 = vsel %vm633_vm11, %v696_v46, %v695_v2  ;;  %p1783_p2 = por %p1782_p1, %p1781_p0 }
 0x1e4   :  { %v708_v48 = vpop.permute.xlu1 %707  ;;  %v563_v61 = vadd.f32 %v561_v24, %v553_v44  ;;  %v883_v16 = vpop.permute.xlu0 %882 }
 0x1e5   :  { %v709_v1 = vrot.slane %v708_v48, 6  ;;  %v884_v18 = vrot.slane %v883_v16, 6  ;;  %p1784_p3 = pnand %p1783_p2, %p1777_p13 }
 0x1e6   :  { %v699_v28 = vadd.f32 %v697_v34, %v563_v61 }
 0x1e7   :  { %v710_v19 = vsel %vm633_vm11, %v709_v1, %v708_v48  ;;  %v885_v14 = vsel %vm824_vm12, %v884_v18, %v883_v16 }
 0x1e8   :  { %v893_v45 = vpop.permute.xlu1 %892  ;;  %v712_v26 = vadd.f32 %v710_v19, %v699_v28  ;;  %v1024_v10 = vpop.permute.xlu0 %1023 }
 0x1e9   :  { %v894_v22 = vrot.slane %v893_v45, 6  ;;  %v1025_v63 = vrot.slane %v1024_v10, 6 }
 0x1ea   :  { %v887_v47 = vadd.f32 %v885_v14, %v712_v26 }
 0x1eb   :  { %v895_v30 = vsel %vm824_vm12, %v894_v22, %v893_v45  ;;  %v1026_v25 = vsel %vm965_vm13, %v1025_v63, %v1024_v10 }
 0x1ec   :  { %v1034_v37 = vpop.permute.xlu1 %1033  ;;  %v897_v57 = vadd.f32 %v895_v30, %v887_v47  ;;  %v1165_v43 = vpop.permute.xlu0 %1164 }
 0x1ed   :  { %v1035_v23 = vrot.slane %v1034_v37, 6  ;;  %v1166_v0 = vrot.slane %v1165_v43, 6 }
 0x1ee   :  { %v1028_v59 = vadd.f32 %v1026_v25, %v897_v57 }
 0x1ef   :  { %v1036_v41 = vsel %vm965_vm13, %v1035_v23, %v1034_v37  ;;  %v1167_v51 = vsel %vm1106_vm14, %v1166_v0, %v1165_v43 }
 0x1f0   :  { %v1175_v20 = vpop.permute.xlu1 %1174  ;;  %v1038_v56 = vadd.f32 %v1036_v41, %v1028_v59 }
 0x1f1   :  { %v1176_v7 = vrot.slane %v1175_v20, 6 }
 0x1f2   :  { %v1169_v9 = vadd.f32 %v1167_v51, %v1038_v56 }
 0x1f3   :  { %v1177_v11 = vsel %vm1106_vm14, %v1176_v7, %v1175_v20 }
 0x1f4   :  { %v1179_v13 = vadd.f32 %v1177_v11, %v1169_v9 }
 0x22f   :  { %v1291_v17 = vpop.permute.xlu0 %1290 }
 0x230   :  { %v1292_v27 = vrot.slane %v1291_v17, 6 }
 0x232   :  { %v1293_v54 = vsel %vm633_vm11, %v1292_v27, %v1291_v17 }
 0x233   :  { %v1347_v50 = vpop.permute.xlu1 %1346  ;;  %v1295_v8 = vadd.f32 %v1293_v54, %v1179_v13 }
 0x234   :  { %v1348_v12 = vrot.slane %v1347_v50, 6 }
 0x236   :  { %v1349_v21 = vsel %vm633_vm11, %v1348_v12, %v1347_v50 }
 0x237   :  { %v1403_v6 = vpop.permute.xlu0 %1402  ;;  %v1351_v55 = vadd.f32 %v1349_v21, %v1295_v8 }
 0x238   :  { %v1404_v15 = vrot.slane %v1403_v6, 6 }
 0x23a   :  { %v1405_v32 = vsel %vm633_vm11, %v1404_v15, %v1403_v6 }
 0x23b   :  { %v1407_v58 = vadd.f32 %v1405_v32, %v1351_v55 }
 0x249   :  { %v1459_v42 = vpop.permute.xlu1 %1458 }
 0x24a   :  { %v1460_v29 = vrot.slane %v1459_v42, 6 }
 0x24c   :  { %v1461_v4 = vsel %vm633_vm11, %v1460_v29, %v1459_v42 }
 0x24d   :  { %v1515_v3 = vpop.permute.xlu0 %1514  ;;  %v1463_v33 = vadd.f32 %v1461_v4, %v1407_v58 }
 0x24e   :  { %v1516_v49 = vrot.slane %v1515_v3, 6 }
 0x250   :  { %v1517_v38 = vsel %vm633_vm11, %v1516_v49, %v1515_v3 }
 0x251   :  { %v1571_v35 = vpop.permute.xlu1 %1570  ;;  %v1519_v39 = vadd.f32 %v1517_v38, %v1463_v33 }
 0x252   :  { %v1572_v36 = vrot.slane %v1571_v35, 6 }
 0x254   :  { %v1573_v53 = vsel %vm633_vm11, %v1572_v36, %v1571_v35 }
 0x255   :  { %v1575_v40 = vadd.f32 %v1573_v53, %v1519_v39 }
 0x257   :  { %v1577_v5 = vadd.f32 %v1576_v60, %v1575_v40 }
 0x259   :  { %v1704_v52 = vmul.f32 -1.442695, %v1577_v5 }
 0x25b   :  { %1732 = vpow2.f32 %v1704_v52 }
 0x265   :  { %v1733_v62 = vpop.eup %1732 }
 0x266   :  { %v1581_v31 = vadd.f32 1.0, %v1733_v62 }
 0x268   :  { %1734 = vrcp.f32 %v1581_v31 }
 0x272   :  { %v1735_v2 = vpop.eup %1734 }
 0x273   :  { %1585 = vrot.lane.b32.xlu0 %v1735_v2, %s1817_s24 }
 0x2e5   :  { %v1586_v44 = vpop.permute.xlu0 %1585 }
 0x2e6   :  { %v1587_v24 = vrot.slane %v1586_v44, 2 }
 0x2e8   :  { %v1588_v46 = vsel %vm965_vm13, %v1586_v44, %v1587_v24 }
 0x2e9   :  { %1590 = vst [vmem:[#allocation10] sm:$0xf] %v1588_v46 }
 0x2ea   :  { %1787 = shalt.err (!%p1784_p3)
}
 0x2eb   :  { %s1788_s21 = scalar_lea.hbm %s2472_s3, 64 }
 0x2ec   :  { %p1789_p4 = scmp.ne.s32.totalorder %s2472_s3, %s1788_s21  ;;  %p1792_p5 = scmp.lt.u32.totalorder %s1788_s21, %s2472_s3 }
 0x2ee   :  { %p1794_p6 = pnand %p1792_p5, %p1789_p4 }
 0x2f0   :  { %1797 = shalt.err (!%p1794_p6)
}
 0x2f1   :  { %1600 = dma.vmem_to_hbm [thread:$0]  %s1598_s17, 64, %s2472_s3, [#allocation7]  }
 0x2f2   :  { %1802 = dma.done.wait [#allocation7], 64  }
 0x2f3   :  { %1803 = vsyncadd [#allocation7], 4294967232 }
 0x2f4   :  { %1604 = vsyncpa [#allocation6], 1 }
 0x2f5   :  { %1605 = vsyncpa [#allocation7], 1 }
 0x2f6   :  { %1606 = vsyncpa [#allocation8], 1 }

</bundles_post_ra>
